<compile_context>
chip_gen: v7x
topology: tpu7x:2x2x1
jax: 0.10.0
libtpu: 0.0.40
codegen_flags: <defaults>
</compile_context>

<pallas_src>
import numpy as np
import jax
import jax.numpy as jnp
from jax import lax
from jax.experimental import pallas as pl
from jax.experimental.pallas import tpu as pltpu  # noqa: F401  (TPU backend)

N_REAL = 34          # karate club nodes
N_PAD = 128          # src/node axis (lane-dense; K dim of aggregation)
R_PAD = 40           # dst/row axis = ceil(34/8)*8 (sublane granularity)
NEG_SLOPE = 0.2      # GATConv negative_slope
NUM_HEADS = 2
NUM_FEATURES = 8
NUM_HIDDEN = 16
NUM_CLASSES = 8
MASK_VAL = 1e30      # additive mask magnitude for non-edges

DIN = (NUM_FEATURES, NUM_HEADS * NUM_HIDDEN, NUM_HEADS * NUM_HIDDEN, NUM_HEADS * NUM_HIDDEN)
OUTF = (NUM_HIDDEN, NUM_HIDDEN, NUM_HIDDEN, NUM_CLASSES)


# --------------------------------------------------------------- slab layout
def _layout():
    offs, off = {}, 0

    def alloc(name, rows):
        nonlocal off
        offs[name] = off
        off = ((off + rows + 15) // 16) * 16          # 16-row (bf16 tile) aligned

    alloc("adj", R_PAD)
    alloc("x", N_PAD)
    for i, d in enumerate(DIN):
        alloc(f"wp{i}", d)
    for i in range(4):
        alloc(f"al{i}", NUM_HEADS)
    return offs, off


_OFF, SLAB_ROWS = _layout()


def _detect_bf16_exp():
    # bf16 EUP transcendentals only pay off on v6e / v7x; keep f32 on older gens.
    try:
        kind = jax.devices()[0].device_kind.lower()
    except Exception:
        return False
    return ("tpu" in kind) and not any(t in kind for t in ("v2", "v3", "v4", "v5"))


USE_BF16_EXP = _detect_bf16_exp()


# ---------------------------------------------------------------- graph utils
def build_karate_club_edges():
    src = np.array([1, 2, 2, 3, 3, 3, 4, 5, 6, 6, 6, 7, 7, 7, 7, 8, 8, 9, 10, 10,
                    10, 11, 12, 12, 13, 13, 13, 13, 16, 16, 17, 17, 19, 19, 21, 21,
                    25, 25, 27, 27, 27, 28, 29, 29, 30, 30, 31, 31, 31, 31, 32, 32,
                    32, 32, 32, 32, 32, 32, 32, 32, 32, 33, 33, 33, 33, 33, 33, 33,
                    33, 33, 33, 33, 33, 33, 33, 33, 33, 33])
    dst = np.array([0, 0, 1, 0, 1, 2, 0, 0, 0, 4, 5, 0, 1, 2, 3, 0, 2, 2, 0, 4,
                    5, 0, 0, 3, 0, 1, 2, 3, 5, 6, 0, 1, 0, 1, 0, 1, 23, 24, 2, 23,
                    24, 2, 23, 26, 1, 8, 0, 24, 25, 28, 2, 8, 14, 15, 18, 20, 22, 23,
                    29, 30, 31, 8, 9, 13, 14, 15, 18, 19, 20, 22, 23, 26, 27, 28, 29,
                    30, 31, 32])
    u = np.concatenate([src, dst]).astype(np.int32)
    v = np.concatenate([dst, src]).astype(np.int32)
    return u, v


def full_spec(shape):
    nd = len(shape)
    return pl.BlockSpec(shape, lambda *_, _nd=nd: (0,) * _nd)


# -------------------------------------------------------- fused forward kernel
def fused_forward_kernel(slab_ref, bias_ref, s_ref):
    f32, bf16 = jnp.float32, jnp.bfloat16

    # edge mask loaded once, (40, 128): 0 on edges, ~-1e30 on non-edges
    adj_bias = slab_ref[_OFF["adj"]:_OFF["adj"] + R_PAD, :].astype(f32)

    def bd_mask(out_feats):
        # block-diagonal selector (256, H*F): rows<128 keep head-0 cols, rows>=128 head-1
        hf = NUM_HEADS * out_feats
        row_hi = lax.broadcasted_iota(jnp.int32, (2 * N_PAD, hf), 0) >= N_PAD
        col_hi = lax.broadcasted_iota(jnp.int32, (2 * N_PAD, hf), 1) >= out_feats
        return jnp.where(row_hi == col_hi, 1.0, 0.0).astype(bf16)

    bd_hid = bd_mask(NUM_HIDDEN)     # (256, 32)
    bd_out = bd_mask(NUM_CLASSES)    # (256, 16)

    def gat_layer(h, idx, mask):
        din, out_feats = DIN[idx], OUTF[idx]
        hf = NUM_HEADS * out_feats
        r_wp, r_al = _OFF[f"wp{idx}"], _OFF[f"al{idx}"]
        wp = slab_ref[r_wp:r_wp + din, 0:hf + NUM_HEADS]        # (din, hf+2) bf16
        al = slab_ref[r_al:r_al + NUM_HEADS, 0:hf]              # (2, hf)     bf16
        b = bias_ref[idx:idx + 1, 0:hf]                         # (1, hf)     f32

        # fused fc projection + attn_r logits: one MXU push
        proj = jnp.dot(h.astype(bf16), wp, preferred_element_type=f32)  # (128, hf+2)
        feat = proj[:, 0:hf].astype(bf16)                                # (128, hf)
        er = proj[0:R_PAD, hf:hf + NUM_HEADS]                            # (40, 2) f32
        # attn_l (src-side) logits for both heads in one small matmul
        el = lax.dot_general(al, feat, (((1,), (1,)), ((), ())),
                             preferred_element_type=f32)                 # (2, 128)

        a_heads = []
        for hd in range(NUM_HEADS):                                      # static unroll
            e = er[:, hd:hd + 1] + el[hd:hd + 1, :]                      # (40, 128)
            e = jnp.maximum(e, NEG_SLOPE * e)                            # leaky_relu
            e = e + adj_bias                                             # additive mask
            m = jnp.max(e, axis=-1, keepdims=True)
            z = e - m                                                    # f32
            p = jnp.exp(z.astype(bf16)) if USE_BF16_EXP else jnp.exp(z)
            p32 = p.astype(f32)
            denom = jnp.sum(p32, axis=-1, keepdims=True)                 # >= 1 always
            a = (p32 * pl.reciprocal(denom, approx=True)).astype(bf16)   # EUP recip
            a_heads.append(a)

        # merged both-head aggregation + head concat: one K=256 bf16 matmul
        att = jnp.concatenate(a_heads, axis=-1)                          # (40, 256)
        feat_bd = jnp.concatenate([feat, feat], axis=0) * mask           # (256, hf)
        rst = jnp.dot(att, feat_bd, preferred_element_type=f32)          # (40, hf)
        return rst + b

    def pad_rows(x):  # (40, w) f32 -> (128, w) f32 for the next layer's K dim
        return jnp.concatenate(
            [x, jnp.zeros((N_PAD - R_PAD, x.shape[1]), jnp.float32)], axis=0)

    h = slab_ref[_OFF["x"]:_OFF["x"] + N_PAD, 0:NUM_FEATURES]            # (128, 8) bf16
    h = gat_layer(h, 0, bd_hid)
    h = gat_layer(pad_rows(h), 1, bd_hid)
    h = gat_layer(pad_rows(h), 2, bd_hid)
    out = gat_layer(pad_rows(h), 3, bd_out)                              # (40, 16)

    # final GAT layer head-mean + DotProductPredictor (all-pairs scores, lane-dense)
    logits = 0.5 * (out[:, 0:NUM_CLASSES] + out[:, NUM_CLASSES:2 * NUM_CLASSES])
    logits_pad = jnp.concatenate(
        [logits, jnp.zeros((N_PAD - R_PAD, NUM_CLASSES), jnp.float32)], axis=0)
    s_ref[...] = lax.dot_general(logits, logits_pad, (((1,), (1,)), ((), ())),
                                 preferred_element_type=jnp.float32)     # (40, 128)


def fused_forward(slab_bf, bias_f32):
    return pl.pallas_call(
        fused_forward_kernel,
        out_shape=jax.ShapeDtypeStruct((R_PAD, N_PAD), jnp.float32),
        in_specs=[full_spec(slab_bf.shape), full_spec(bias_f32.shape)],
        out_specs=full_spec((R_PAD, N_PAD)),
    )(slab_bf, bias_f32)


# ---------------------------------------------------------------- model glue
def block_rows(attn):
    """(H, F) attention vectors -> (H, H*F) block-row matrix."""
    H_, F_ = attn.shape
    eye = jnp.eye(H_, dtype=attn.dtype)
    return (eye[:, :, None] * attn[:, None, :]).reshape(H_, H_ * F_)


def init_gat_layer(key, din, num_heads, out_feats, scale=0.1):
    k1, k2, k3, k4 = jax.random.split(key, 4)
    W = scale * jax.random.normal(k1, (din, num_heads * out_feats), jnp.float32)
    al = scale * jax.random.normal(k2, (num_heads, out_feats), jnp.float32)
    ar = scale * jax.random.normal(k3, (num_heads, out_feats), jnp.float32)
    b = scale * jax.random.normal(k4, (1, num_heads * out_feats), jnp.float32)
    return W, al, ar, b


def pack_inputs(x, adj_bias40, params):
    """Fold attn_r into the projection weight and pack node features, edge mask,
    projection weights and attn_l vectors into ONE bf16 slab (+ small f32 bias
    slab) -> 2 input DMAs instead of ~18."""
    slab = jnp.zeros((SLAB_ROWS, N_PAD), jnp.float32)
    slab = slab.at[_OFF["adj"]:_OFF["adj"] + R_PAD, :].set(adj_bias40)
    slab = slab.at[_OFF["x"]:_OFF["x"] + x.shape[0], 0:x.shape[1]].set(x)
    bias = jnp.zeros((8, NUM_HEADS * NUM_HIDDEN), jnp.float32)
    for i, (W, al, ar, b) in enumerate(params):
        ar_blk = block_rows(ar)                                  # (H, H*F)
        al_blk = block_rows(al)                                  # (H, H*F)
        wp = jnp.concatenate([W, W @ ar_blk.T], axis=1)          # (din, H*F + H)
        r = _OFF[f"wp{i}"]
        slab = slab.at[r:r + wp.shape[0], 0:wp.shape[1]].set(wp)
        r = _OFF[f"al{i}"]
        slab = slab.at[r:r + NUM_HEADS, 0:al_blk.shape[1]].set(al_blk)
        bias = bias.at[i, 0:b.shape[1]].set(b[0])
    return slab.astype(jnp.bfloat16), bias


def reference_forward(x, adj_t, params):
    """Pure-JAX f32 reference matching DGL GATConv semantics (no dropout/residual)."""
    h = x
    out = None
    for (W, al, ar, b) in params:
        N = h.shape[0]
        Hh, Ff = al.shape
        feat = (h @ W).reshape(N, Hh, Ff)
        er = jnp.einsum("nhf,hf->nh", feat, ar)                  # dst side
        el = jnp.einsum("nhf,hf->nh", feat, al)                  # src side
        e = er[:, None, :] + el[None, :, :]                      # (dst, src, H)
        e = jnp.where(e > 0, e, NEG_SLOPE * e)
        e = jnp.where(adj_t[:, :, None] > 0, e, -jnp.inf)
        a = jax.nn.softmax(e, axis=1)                            # edge_softmax over src
        rst = jnp.einsum("dsh,shf->dhf", a, feat)
        out = rst.reshape(N, Hh * Ff) + b
        h = out
    C = params[-1][1].shape[1]
    return 0.5 * (out[:, :C] + out[:, C:2 * C])                  # head mean


@jax.jit
def model_forward(slab_bf, bias_f32, pu, pv, nu, nv):
    S = fused_forward(slab_bf, bias_f32)                         # one kernel launch total
    # TODO(synk): the per-edge u_dot_v gather stays as tiny XLA glue rather than
    # an in-kernel scalar-prefetch gather (156 scalar VMEM reads; only worth it
    # if the trace shows this glue on the critical path).
    pos_score = S[pu, pv][:, None]                               # (E, 1)
    neg_score = S[nu, nv][:, None]                               # (E_neg, 1)
    return pos_score, neg_score


if __name__ == "__main__":
    # --- graphs (deterministic) ---
    u, v = build_karate_club_edges()                             # positive edges u -> v
    rng = np.random.RandomState(0)
    neg_u = u.copy()
    neg_v = rng.randint(0, N_REAL, size=u.shape[0]).astype(np.int32)

    adj40_np = np.zeros((R_PAD, N_PAD), np.float32)
    adj40_np[v, u] = 1.0                                         # adj_t[dst, src]
    adj_bias40 = jnp.asarray((adj40_np - 1.0) * MASK_VAL)        # 0 on edges, -1e30 off

    # --- deterministic inputs & parameters ---
    key = jax.random.PRNGKey(0)
    kx, k0, k1, k2, k3 = jax.random.split(key, 5)
    x = jax.random.normal(kx, (N_REAL, NUM_FEATURES), jnp.float32)
    params = [
        init_gat_layer(k0, NUM_FEATURES, NUM_HEADS, NUM_HIDDEN),
        init_gat_layer(k1, NUM_HEADS * NUM_HIDDEN, NUM_HEADS, NUM_HIDDEN),
        init_gat_layer(k2, NUM_HEADS * NUM_HIDDEN, NUM_HEADS, NUM_HIDDEN),
        init_gat_layer(k3, NUM_HEADS * NUM_HIDDEN, NUM_HEADS, NUM_CLASSES),
    ]

    slab_bf, bias_f32 = pack_inputs(x, adj_bias40, params)
    pu, pv = jnp.asarray(u), jnp.asarray(v)
    nu, nv = jnp.asarray(neg_u), jnp.asarray(neg_v)

    pos_score, neg_score = model_forward(slab_bf, bias_f32, pu, pv, nu, nv)
    jax.block_until_ready((pos_score, neg_score))

    # --- correctness vs pure-JAX f32 reference (bf16/approx-recip tolerance) ---
    logits_ref = reference_forward(x, jnp.asarray(adj40_np[:N_REAL, :N_REAL]), params)
    pos_ref = jnp.sum(logits_ref[pu] * logits_ref[pv], axis=-1, keepdims=True)
    neg_ref = jnp.sum(logits_ref[nu] * logits_ref[nv], axis=-1, keepdims=True)
    err = float(jnp.max(jnp.abs(jnp.concatenate([pos_score - pos_ref,
                                                 neg_score - neg_ref]))))
    scale = float(jnp.max(jnp.abs(jnp.concatenate([pos_ref, neg_ref]))))

    assert pos_score.shape == (u.shape[0], 1) and neg_score.shape == (neg_u.shape[0], 1)
    assert bool(jnp.all(jnp.isfinite(pos_score))) and bool(jnp.all(jnp.isfinite(neg_score)))
    assert err <= 5e-2 + 0.25 * scale, f"mismatch vs f32 reference: err={err}, scale={scale}"
    print("KERNEL_OK")
</pallas_src>

<mosaic_0001>
module attributes {stable_mosaic.version = 11 : i64} {
  func.func @fused_forward_kernel(%arg0: memref<352x128xbf16, #tpu.memory_space<vmem>>, %arg1: memref<8x32xf32, #tpu.memory_space<vmem>>, %arg2: memref<40x128xf32, #tpu.memory_space<vmem>>) attributes {dimension_semantics = [], scalar_prefetch = 0 : i64, scratch_operands = 0 : i64, tpu.core_type = #tpu.core_type<tc>} {
    %c0 = arith.constant 0 : index
    %c0_0 = arith.constant 0 : index
    %0 = vector.load %arg0[%c0, %c0_0] : memref<352x128xbf16, #tpu.memory_space<vmem>>, vector<40x128xbf16>
    %1 = arith.extf %0 : vector<40x128xbf16> to vector<40x128xf32>
    %2 = tpu.iota {dimensions = array<i32: 0>} : vector<256x32xi32>
    %c128_i32 = arith.constant 128 : i32
    %3 = vector.broadcast %c128_i32 : i32 to vector<256x32xi32>
    %4 = arith.cmpi sge, %2, %3 : vector<256x32xi32>
    %5 = tpu.iota {dimensions = array<i32: 1>} : vector<256x32xi32>
    %c16_i32 = arith.constant 16 : i32
    %6 = vector.broadcast %c16_i32 : i32 to vector<256x32xi32>
    %7 = arith.cmpi sge, %5, %6 : vector<256x32xi32>
    %8 = arith.xori %4, %7 : vector<256x32xi1>
    %cst = arith.constant dense<true> : vector<256x32xi1>
    %9 = arith.xori %8, %cst : vector<256x32xi1>
    %cst_1 = arith.constant 1.000000e+00 : f32
    %cst_2 = arith.constant 0.000000e+00 : f32
    %10 = vector.broadcast %cst_1 : f32 to vector<256x32xf32>
    %11 = vector.broadcast %cst_2 : f32 to vector<256x32xf32>
    %12 = arith.select %9, %10, %11 : vector<256x32xi1>, vector<256x32xf32>
    %13 = arith.truncf %12 : vector<256x32xf32> to vector<256x32xbf16>
    %14 = tpu.iota {dimensions = array<i32: 0>} : vector<256x16xi32>
    %c128_i32_3 = arith.constant 128 : i32
    %15 = vector.broadcast %c128_i32_3 : i32 to vector<256x16xi32>
    %16 = arith.cmpi sge, %14, %15 : vector<256x16xi32>
    %17 = tpu.iota {dimensions = array<i32: 1>} : vector<256x16xi32>
    %c8_i32 = arith.constant 8 : i32
    %18 = vector.broadcast %c8_i32 : i32 to vector<256x16xi32>
    %19 = arith.cmpi sge, %17, %18 : vector<256x16xi32>
    %20 = arith.xori %16, %19 : vector<256x16xi1>
    %cst_4 = arith.constant dense<true> : vector<256x16xi1>
    %21 = arith.xori %20, %cst_4 : vector<256x16xi1>
    %cst_5 = arith.constant 1.000000e+00 : f32
    %cst_6 = arith.constant 0.000000e+00 : f32
    %22 = vector.broadcast %cst_5 : f32 to vector<256x16xf32>
    %23 = vector.broadcast %cst_6 : f32 to vector<256x16xf32>
    %24 = arith.select %21, %22, %23 : vector<256x16xi1>, vector<256x16xf32>
    %25 = arith.truncf %24 : vector<256x16xf32> to vector<256x16xbf16>
    %c48 = arith.constant 48 : index
    %c0_7 = arith.constant 0 : index
    %26 = vector.load %arg0[%c48, %c0_7] : memref<352x128xbf16, #tpu.memory_space<vmem>>, vector<128x8xbf16>
    %c176 = arith.constant 176 : index
    %c0_8 = arith.constant 0 : index
    %27 = vector.load %arg0[%c176, %c0_8] : memref<352x128xbf16, #tpu.memory_space<vmem>>, vector<8x34xbf16>
    %c288 = arith.constant 288 : index
    %c0_9 = arith.constant 0 : index
    %28 = vector.load %arg0[%c288, %c0_9] : memref<352x128xbf16, #tpu.memory_space<vmem>>, vector<2x32xbf16>
    %c0_10 = arith.constant 0 : index
    %c0_11 = arith.constant 0 : index
    %29 = vector.load %arg1[%c0_10, %c0_11] : memref<8x32xf32, #tpu.memory_space<vmem>>, vector<1x32xf32>
    %cst_12 = arith.constant dense<0.000000e+00> : vector<128x34xf32>
    %30 = tpu.matmul %26, %27, %cst_12 {dimension_numbers = #tpu.dot_dimension_numbers<[1], [0], [0], [1], [0, 0, 1, 1], [], []>} : vector<128x8xbf16>, vector<8x34xbf16>, vector<128x34xf32> -> vector<128x34xf32>
    %31 = vector.extract_strided_slice %30 {offsets = [0, 0], sizes = [128, 32], strides = [1, 1]} : vector<128x34xf32> to vector<128x32xf32>
    %32 = arith.truncf %31 : vector<128x32xf32> to vector<128x32xbf16>
    %33 = vector.extract_strided_slice %30 {offsets = [0, 32], sizes = [40, 2], strides = [1, 1]} : vector<128x34xf32> to vector<40x2xf32>
    %cst_13 = arith.constant dense<0.000000e+00> : vector<2x128xf32>
    %34 = tpu.matmul %28, %32, %cst_13 {dimension_numbers = #tpu.dot_dimension_numbers<[1], [1], [0], [0], [0, 0, 1, 0], [], []>} : vector<2x32xbf16>, vector<128x32xbf16>, vector<2x128xf32> -> vector<2x128xf32>
    %35 = vector.extract_strided_slice %33 {offsets = [0, 0], sizes = [40, 1], strides = [1, 1]} : vector<40x2xf32> to vector<40x1xf32>
    %36 = vector.extract_strided_slice %34 {offsets = [0, 0], sizes = [1, 128], strides = [1, 1]} : vector<2x128xf32> to vector<1x128xf32>
    %37 = vector.broadcast %35 : vector<40x1xf32> to vector<40x128xf32>
    %38 = vector.broadcast %36 : vector<1x128xf32> to vector<40x128xf32>
    %39 = arith.addf %37, %38 : vector<40x128xf32>
    %cst_14 = arith.constant 2.000000e-01 : f32
    %40 = vector.broadcast %cst_14 : f32 to vector<40x128xf32>
    %41 = arith.mulf %40, %39 : vector<40x128xf32>
    %42 = arith.maximumf %39, %41 : vector<40x128xf32>
    %43 = arith.addf %42, %1 : vector<40x128xf32>
    %cst_15 = arith.constant dense<0xFF800000> : vector<40xf32>
    %44 = vector.multi_reduction <maximumf>, %43, %cst_15 [1] : vector<40x128xf32> to vector<40xf32>
    %45 = vector.shape_cast %44 : vector<40xf32> to vector<40x1xf32>
    %46 = vector.broadcast %45 : vector<40x1xf32> to vector<40x128xf32>
    %47 = arith.subf %43, %46 : vector<40x128xf32>
    %48 = math.exp %47 : vector<40x128xf32>
    %cst_16 = arith.constant dense<0.000000e+00> : vector<40xf32>
    %49 = vector.multi_reduction <add>, %48, %cst_16 [1] : vector<40x128xf32> to vector<40xf32>
    %50 = vector.shape_cast %49 : vector<40xf32> to vector<40x1xf32>
    %51 = tpu.reciprocal %50 {approx = true} : vector<40x1xf32> -> vector<40x1xf32>
    %52 = vector.broadcast %51 : vector<40x1xf32> to vector<40x128xf32>
    %53 = arith.mulf %48, %52 : vector<40x128xf32>
    %54 = arith.truncf %53 : vector<40x128xf32> to vector<40x128xbf16>
    %55 = vector.extract_strided_slice %33 {offsets = [0, 1], sizes = [40, 1], strides = [1, 1]} : vector<40x2xf32> to vector<40x1xf32>
    %56 = vector.extract_strided_slice %34 {offsets = [1, 0], sizes = [1, 128], strides = [1, 1]} : vector<2x128xf32> to vector<1x128xf32>
    %57 = vector.broadcast %55 : vector<40x1xf32> to vector<40x128xf32>
    %58 = vector.broadcast %56 : vector<1x128xf32> to vector<40x128xf32>
    %59 = arith.addf %57, %58 : vector<40x128xf32>
    %cst_17 = arith.constant 2.000000e-01 : f32
    %60 = vector.broadcast %cst_17 : f32 to vector<40x128xf32>
    %61 = arith.mulf %60, %59 : vector<40x128xf32>
    %62 = arith.maximumf %59, %61 : vector<40x128xf32>
    %63 = arith.addf %62, %1 : vector<40x128xf32>
    %cst_18 = arith.constant dense<0xFF800000> : vector<40xf32>
    %64 = vector.multi_reduction <maximumf>, %63, %cst_18 [1] : vector<40x128xf32> to vector<40xf32>
    %65 = vector.shape_cast %64 : vector<40xf32> to vector<40x1xf32>
    %66 = vector.broadcast %65 : vector<40x1xf32> to vector<40x128xf32>
    %67 = arith.subf %63, %66 : vector<40x128xf32>
    %68 = math.exp %67 : vector<40x128xf32>
    %cst_19 = arith.constant dense<0.000000e+00> : vector<40xf32>
    %69 = vector.multi_reduction <add>, %68, %cst_19 [1] : vector<40x128xf32> to vector<40xf32>
    %70 = vector.shape_cast %69 : vector<40xf32> to vector<40x1xf32>
    %71 = tpu.reciprocal %70 {approx = true} : vector<40x1xf32> -> vector<40x1xf32>
    %72 = vector.broadcast %71 : vector<40x1xf32> to vector<40x128xf32>
    %73 = arith.mulf %68, %72 : vector<40x128xf32>
    %74 = arith.truncf %73 : vector<40x128xf32> to vector<40x128xbf16>
    %75 = tpu.concatenate %54, %74 in 1 : vector<40x128xbf16>, vector<40x128xbf16> -> vector<40x256xbf16>
    %76 = tpu.concatenate %32, %32 in 0 : vector<128x32xbf16>, vector<128x32xbf16> -> vector<256x32xbf16>
    %77 = arith.mulf %76, %13 : vector<256x32xbf16>
    %cst_20 = arith.constant dense<0.000000e+00> : vector<40x32xf32>
    %78 = tpu.matmul %75, %77, %cst_20 {dimension_numbers = #tpu.dot_dimension_numbers<[1], [0], [0], [1], [0, 0, 1, 1], [], []>} : vector<40x256xbf16>, vector<256x32xbf16>, vector<40x32xf32> -> vector<40x32xf32>
    %79 = vector.broadcast %29 : vector<1x32xf32> to vector<40x32xf32>
    %80 = arith.addf %78, %79 : vector<40x32xf32>
    %cst_21 = arith.constant 0.000000e+00 : f32
    %81 = vector.broadcast %cst_21 : f32 to vector<88x32xf32>
    %82 = tpu.concatenate %80, %81 in 0 : vector<40x32xf32>, vector<88x32xf32> -> vector<128x32xf32>
    %c192 = arith.constant 192 : index
    %c0_22 = arith.constant 0 : index
    %83 = vector.load %arg0[%c192, %c0_22] : memref<352x128xbf16, #tpu.memory_space<vmem>>, vector<32x34xbf16>
    %c304 = arith.constant 304 : index
    %c0_23 = arith.constant 0 : index
    %84 = vector.load %arg0[%c304, %c0_23] : memref<352x128xbf16, #tpu.memory_space<vmem>>, vector<2x32xbf16>
    %c1 = arith.constant 1 : index
    %c0_24 = arith.constant 0 : index
    %85 = vector.load %arg1[%c1, %c0_24] : memref<8x32xf32, #tpu.memory_space<vmem>>, vector<1x32xf32>
    %86 = arith.truncf %82 : vector<128x32xf32> to vector<128x32xbf16>
    %cst_25 = arith.constant dense<0.000000e+00> : vector<128x34xf32>
    %87 = tpu.matmul %86, %83, %cst_25 {dimension_numbers = #tpu.dot_dimension_numbers<[1], [0], [0], [1], [0, 0, 1, 1], [], []>} : vector<128x32xbf16>, vector<32x34xbf16>, vector<128x34xf32> -> vector<128x34xf32>
    %88 = vector.extract_strided_slice %87 {offsets = [0, 0], sizes = [128, 32], strides = [1, 1]} : vector<128x34xf32> to vector<128x32xf32>
    %89 = arith.truncf %88 : vector<128x32xf32> to vector<128x32xbf16>
    %90 = vector.extract_strided_slice %87 {offsets = [0, 32], sizes = [40, 2], strides = [1, 1]} : vector<128x34xf32> to vector<40x2xf32>
    %cst_26 = arith.constant dense<0.000000e+00> : vector<2x128xf32>
    %91 = tpu.matmul %84, %89, %cst_26 {dimension_numbers = #tpu.dot_dimension_numbers<[1], [1], [0], [0], [0, 0, 1, 0], [], []>} : vector<2x32xbf16>, vector<128x32xbf16>, vector<2x128xf32> -> vector<2x128xf32>
    %92 = vector.extract_strided_slice %90 {offsets = [0, 0], sizes = [40, 1], strides = [1, 1]} : vector<40x2xf32> to vector<40x1xf32>
    %93 = vector.extract_strided_slice %91 {offsets = [0, 0], sizes = [1, 128], strides = [1, 1]} : vector<2x128xf32> to vector<1x128xf32>
    %94 = vector.broadcast %92 : vector<40x1xf32> to vector<40x128xf32>
    %95 = vector.broadcast %93 : vector<1x128xf32> to vector<40x128xf32>
    %96 = arith.addf %94, %95 : vector<40x128xf32>
    %cst_27 = arith.constant 2.000000e-01 : f32
    %97 = vector.broadcast %cst_27 : f32 to vector<40x128xf32>
    %98 = arith.mulf %97, %96 : vector<40x128xf32>
    %99 = arith.maximumf %96, %98 : vector<40x128xf32>
    %100 = arith.addf %99, %1 : vector<40x128xf32>
    %cst_28 = arith.constant dense<0xFF800000> : vector<40xf32>
    %101 = vector.multi_reduction <maximumf>, %100, %cst_28 [1] : vector<40x128xf32> to vector<40xf32>
    %102 = vector.shape_cast %101 : vector<40xf32> to vector<40x1xf32>
    %103 = vector.broadcast %102 : vector<40x1xf32> to vector<40x128xf32>
    %104 = arith.subf %100, %103 : vector<40x128xf32>
    %105 = math.exp %104 : vector<40x128xf32>
    %cst_29 = arith.constant dense<0.000000e+00> : vector<40xf32>
    %106 = vector.multi_reduction <add>, %105, %cst_29 [1] : vector<40x128xf32> to vector<40xf32>
    %107 = vector.shape_cast %106 : vector<40xf32> to vector<40x1xf32>
    %108 = tpu.reciprocal %107 {approx = true} : vector<40x1xf32> -> vector<40x1xf32>
    %109 = vector.broadcast %108 : vector<40x1xf32> to vector<40x128xf32>
    %110 = arith.mulf %105, %109 : vector<40x128xf32>
    %111 = arith.truncf %110 : vector<40x128xf32> to vector<40x128xbf16>
    %112 = vector.extract_strided_slice %90 {offsets = [0, 1], sizes = [40, 1], strides = [1, 1]} : vector<40x2xf32> to vector<40x1xf32>
    %113 = vector.extract_strided_slice %91 {offsets = [1, 0], sizes = [1, 128], strides = [1, 1]} : vector<2x128xf32> to vector<1x128xf32>
    %114 = vector.broadcast %112 : vector<40x1xf32> to vector<40x128xf32>
    %115 = vector.broadcast %113 : vector<1x128xf32> to vector<40x128xf32>
    %116 = arith.addf %114, %115 : vector<40x128xf32>
    %cst_30 = arith.constant 2.000000e-01 : f32
    %117 = vector.broadcast %cst_30 : f32 to vector<40x128xf32>
    %118 = arith.mulf %117, %116 : vector<40x128xf32>
    %119 = arith.maximumf %116, %118 : vector<40x128xf32>
    %120 = arith.addf %119, %1 : vector<40x128xf32>
    %cst_31 = arith.constant dense<0xFF800000> : vector<40xf32>
    %121 = vector.multi_reduction <maximumf>, %120, %cst_31 [1] : vector<40x128xf32> to vector<40xf32>
    %122 = vector.shape_cast %121 : vector<40xf32> to vector<40x1xf32>
    %123 = vector.broadcast %122 : vector<40x1xf32> to vector<40x128xf32>
    %124 = arith.subf %120, %123 : vector<40x128xf32>
    %125 = math.exp %124 : vector<40x128xf32>
    %cst_32 = arith.constant dense<0.000000e+00> : vector<40xf32>
    %126 = vector.multi_reduction <add>, %125, %cst_32 [1] : vector<40x128xf32> to vector<40xf32>
    %127 = vector.shape_cast %126 : vector<40xf32> to vector<40x1xf32>
    %128 = tpu.reciprocal %127 {approx = true} : vector<40x1xf32> -> vector<40x1xf32>
    %129 = vector.broadcast %128 : vector<40x1xf32> to vector<40x128xf32>
    %130 = arith.mulf %125, %129 : vector<40x128xf32>
    %131 = arith.truncf %130 : vector<40x128xf32> to vector<40x128xbf16>
    %132 = tpu.concatenate %111, %131 in 1 : vector<40x128xbf16>, vector<40x128xbf16> -> vector<40x256xbf16>
    %133 = tpu.concatenate %89, %89 in 0 : vector<128x32xbf16>, vector<128x32xbf16> -> vector<256x32xbf16>
    %134 = arith.mulf %133, %13 : vector<256x32xbf16>
    %cst_33 = arith.constant dense<0.000000e+00> : vector<40x32xf32>
    %135 = tpu.matmul %132, %134, %cst_33 {dimension_numbers = #tpu.dot_dimension_numbers<[1], [0], [0], [1], [0, 0, 1, 1], [], []>} : vector<40x256xbf16>, vector<256x32xbf16>, vector<40x32xf32> -> vector<40x32xf32>
    %136 = vector.broadcast %85 : vector<1x32xf32> to vector<40x32xf32>
    %137 = arith.addf %135, %136 : vector<40x32xf32>
    %cst_34 = arith.constant 0.000000e+00 : f32
    %138 = vector.broadcast %cst_34 : f32 to vector<88x32xf32>
    %139 = tpu.concatenate %137, %138 in 0 : vector<40x32xf32>, vector<88x32xf32> -> vector<128x32xf32>
    %c224 = arith.constant 224 : index
    %c0_35 = arith.constant 0 : index
    %140 = vector.load %arg0[%c224, %c0_35] : memref<352x128xbf16, #tpu.memory_space<vmem>>, vector<32x34xbf16>
    %c320 = arith.constant 320 : index
    %c0_36 = arith.constant 0 : index
    %141 = vector.load %arg0[%c320, %c0_36] : memref<352x128xbf16, #tpu.memory_space<vmem>>, vector<2x32xbf16>
    %c2 = arith.constant 2 : index
    %c0_37 = arith.constant 0 : index
    %142 = vector.load %arg1[%c2, %c0_37] : memref<8x32xf32, #tpu.memory_space<vmem>>, vector<1x32xf32>
    %143 = arith.truncf %139 : vector<128x32xf32> to vector<128x32xbf16>
    %cst_38 = arith.constant dense<0.000000e+00> : vector<128x34xf32>
    %144 = tpu.matmul %143, %140, %cst_38 {dimension_numbers = #tpu.dot_dimension_numbers<[1], [0], [0], [1], [0, 0, 1, 1], [], []>} : vector<128x32xbf16>, vector<32x34xbf16>, vector<128x34xf32> -> vector<128x34xf32>
    %145 = vector.extract_strided_slice %144 {offsets = [0, 0], sizes = [128, 32], strides = [1, 1]} : vector<128x34xf32> to vector<128x32xf32>
    %146 = arith.truncf %145 : vector<128x32xf32> to vector<128x32xbf16>
    %147 = vector.extract_strided_slice %144 {offsets = [0, 32], sizes = [40, 2], strides = [1, 1]} : vector<128x34xf32> to vector<40x2xf32>
    %cst_39 = arith.constant dense<0.000000e+00> : vector<2x128xf32>
    %148 = tpu.matmul %141, %146, %cst_39 {dimension_numbers = #tpu.dot_dimension_numbers<[1], [1], [0], [0], [0, 0, 1, 0], [], []>} : vector<2x32xbf16>, vector<128x32xbf16>, vector<2x128xf32> -> vector<2x128xf32>
    %149 = vector.extract_strided_slice %147 {offsets = [0, 0], sizes = [40, 1], strides = [1, 1]} : vector<40x2xf32> to vector<40x1xf32>
    %150 = vector.extract_strided_slice %148 {offsets = [0, 0], sizes = [1, 128], strides = [1, 1]} : vector<2x128xf32> to vector<1x128xf32>
    %151 = vector.broadcast %149 : vector<40x1xf32> to vector<40x128xf32>
    %152 = vector.broadcast %150 : vector<1x128xf32> to vector<40x128xf32>
    %153 = arith.addf %151, %152 : vector<40x128xf32>
    %cst_40 = arith.constant 2.000000e-01 : f32
    %154 = vector.broadcast %cst_40 : f32 to vector<40x128xf32>
    %155 = arith.mulf %154, %153 : vector<40x128xf32>
    %156 = arith.maximumf %153, %155 : vector<40x128xf32>
    %157 = arith.addf %156, %1 : vector<40x128xf32>
    %cst_41 = arith.constant dense<0xFF800000> : vector<40xf32>
    %158 = vector.multi_reduction <maximumf>, %157, %cst_41 [1] : vector<40x128xf32> to vector<40xf32>
    %159 = vector.shape_cast %158 : vector<40xf32> to vector<40x1xf32>
    %160 = vector.broadcast %159 : vector<40x1xf32> to vector<40x128xf32>
    %161 = arith.subf %157, %160 : vector<40x128xf32>
    %162 = math.exp %161 : vector<40x128xf32>
    %cst_42 = arith.constant dense<0.000000e+00> : vector<40xf32>
    %163 = vector.multi_reduction <add>, %162, %cst_42 [1] : vector<40x128xf32> to vector<40xf32>
    %164 = vector.shape_cast %163 : vector<40xf32> to vector<40x1xf32>
    %165 = tpu.reciprocal %164 {approx = true} : vector<40x1xf32> -> vector<40x1xf32>
    %166 = vector.broadcast %165 : vector<40x1xf32> to vector<40x128xf32>
    %167 = arith.mulf %162, %166 : vector<40x128xf32>
    %168 = arith.truncf %167 : vector<40x128xf32> to vector<40x128xbf16>
    %169 = vector.extract_strided_slice %147 {offsets = [0, 1], sizes = [40, 1], strides = [1, 1]} : vector<40x2xf32> to vector<40x1xf32>
    %170 = vector.extract_strided_slice %148 {offsets = [1, 0], sizes = [1, 128], strides = [1, 1]} : vector<2x128xf32> to vector<1x128xf32>
    %171 = vector.broadcast %169 : vector<40x1xf32> to vector<40x128xf32>
    %172 = vector.broadcast %170 : vector<1x128xf32> to vector<40x128xf32>
    %173 = arith.addf %171, %172 : vector<40x128xf32>
    %cst_43 = arith.constant 2.000000e-01 : f32
    %174 = vector.broadcast %cst_43 : f32 to vector<40x128xf32>
    %175 = arith.mulf %174, %173 : vector<40x128xf32>
    %176 = arith.maximumf %173, %175 : vector<40x128xf32>
    %177 = arith.addf %176, %1 : vector<40x128xf32>
    %cst_44 = arith.constant dense<0xFF800000> : vector<40xf32>
    %178 = vector.multi_reduction <maximumf>, %177, %cst_44 [1] : vector<40x128xf32> to vector<40xf32>
    %179 = vector.shape_cast %178 : vector<40xf32> to vector<40x1xf32>
    %180 = vector.broadcast %179 : vector<40x1xf32> to vector<40x128xf32>
    %181 = arith.subf %177, %180 : vector<40x128xf32>
    %182 = math.exp %181 : vector<40x128xf32>
    %cst_45 = arith.constant dense<0.000000e+00> : vector<40xf32>
    %183 = vector.multi_reduction <add>, %182, %cst_45 [1] : vector<40x128xf32> to vector<40xf32>
    %184 = vector.shape_cast %183 : vector<40xf32> to vector<40x1xf32>
    %185 = tpu.reciprocal %184 {approx = true} : vector<40x1xf32> -> vector<40x1xf32>
    %186 = vector.broadcast %185 : vector<40x1xf32> to vector<40x128xf32>
    %187 = arith.mulf %182, %186 : vector<40x128xf32>
    %188 = arith.truncf %187 : vector<40x128xf32> to vector<40x128xbf16>
    %189 = tpu.concatenate %168, %188 in 1 : vector<40x128xbf16>, vector<40x128xbf16> -> vector<40x256xbf16>
    %190 = tpu.concatenate %146, %146 in 0 : vector<128x32xbf16>, vector<128x32xbf16> -> vector<256x32xbf16>
    %191 = arith.mulf %190, %13 : vector<256x32xbf16>
    %cst_46 = arith.constant dense<0.000000e+00> : vector<40x32xf32>
    %192 = tpu.matmul %189, %191, %cst_46 {dimension_numbers = #tpu.dot_dimension_numbers<[1], [0], [0], [1], [0, 0, 1, 1], [], []>} : vector<40x256xbf16>, vector<256x32xbf16>, vector<40x32xf32> -> vector<40x32xf32>
    %193 = vector.broadcast %142 : vector<1x32xf32> to vector<40x32xf32>
    %194 = arith.addf %192, %193 : vector<40x32xf32>
    %cst_47 = arith.constant 0.000000e+00 : f32
    %195 = vector.broadcast %cst_47 : f32 to vector<88x32xf32>
    %196 = tpu.concatenate %194, %195 in 0 : vector<40x32xf32>, vector<88x32xf32> -> vector<128x32xf32>
    %c256 = arith.constant 256 : index
    %c0_48 = arith.constant 0 : index
    %197 = vector.load %arg0[%c256, %c0_48] : memref<352x128xbf16, #tpu.memory_space<vmem>>, vector<32x18xbf16>
    %c336 = arith.constant 336 : index
    %c0_49 = arith.constant 0 : index
    %198 = vector.load %arg0[%c336, %c0_49] : memref<352x128xbf16, #tpu.memory_space<vmem>>, vector<2x16xbf16>
    %c3 = arith.constant 3 : index
    %c0_50 = arith.constant 0 : index
    %199 = vector.load %arg1[%c3, %c0_50] : memref<8x32xf32, #tpu.memory_space<vmem>>, vector<1x16xf32>
    %200 = arith.truncf %196 : vector<128x32xf32> to vector<128x32xbf16>
    %cst_51 = arith.constant dense<0.000000e+00> : vector<128x18xf32>
    %201 = tpu.matmul %200, %197, %cst_51 {dimension_numbers = #tpu.dot_dimension_numbers<[1], [0], [0], [1], [0, 0, 1, 1], [], []>} : vector<128x32xbf16>, vector<32x18xbf16>, vector<128x18xf32> -> vector<128x18xf32>
    %202 = vector.extract_strided_slice %201 {offsets = [0, 0], sizes = [128, 16], strides = [1, 1]} : vector<128x18xf32> to vector<128x16xf32>
    %203 = arith.truncf %202 : vector<128x16xf32> to vector<128x16xbf16>
    %204 = vector.extract_strided_slice %201 {offsets = [0, 16], sizes = [40, 2], strides = [1, 1]} : vector<128x18xf32> to vector<40x2xf32>
    %cst_52 = arith.constant dense<0.000000e+00> : vector<2x128xf32>
    %205 = tpu.matmul %198, %203, %cst_52 {dimension_numbers = #tpu.dot_dimension_numbers<[1], [1], [0], [0], [0, 0, 1, 0], [], []>} : vector<2x16xbf16>, vector<128x16xbf16>, vector<2x128xf32> -> vector<2x128xf32>
    %206 = vector.extract_strided_slice %204 {offsets = [0, 0], sizes = [40, 1], strides = [1, 1]} : vector<40x2xf32> to vector<40x1xf32>
    %207 = vector.extract_strided_slice %205 {offsets = [0, 0], sizes = [1, 128], strides = [1, 1]} : vector<2x128xf32> to vector<1x128xf32>
    %208 = vector.broadcast %206 : vector<40x1xf32> to vector<40x128xf32>
    %209 = vector.broadcast %207 : vector<1x128xf32> to vector<40x128xf32>
    %210 = arith.addf %208, %209 : vector<40x128xf32>
    %cst_53 = arith.constant 2.000000e-01 : f32
    %211 = vector.broadcast %cst_53 : f32 to vector<40x128xf32>
    %212 = arith.mulf %211, %210 : vector<40x128xf32>
    %213 = arith.maximumf %210, %212 : vector<40x128xf32>
    %214 = arith.addf %213, %1 : vector<40x128xf32>
    %cst_54 = arith.constant dense<0xFF800000> : vector<40xf32>
    %215 = vector.multi_reduction <maximumf>, %214, %cst_54 [1] : vector<40x128xf32> to vector<40xf32>
    %216 = vector.shape_cast %215 : vector<40xf32> to vector<40x1xf32>
    %217 = vector.broadcast %216 : vector<40x1xf32> to vector<40x128xf32>
    %218 = arith.subf %214, %217 : vector<40x128xf32>
    %219 = math.exp %218 : vector<40x128xf32>
    %cst_55 = arith.constant dense<0.000000e+00> : vector<40xf32>
    %220 = vector.multi_reduction <add>, %219, %cst_55 [1] : vector<40x128xf32> to vector<40xf32>
    %221 = vector.shape_cast %220 : vector<40xf32> to vector<40x1xf32>
    %222 = tpu.reciprocal %221 {approx = true} : vector<40x1xf32> -> vector<40x1xf32>
    %223 = vector.broadcast %222 : vector<40x1xf32> to vector<40x128xf32>
    %224 = arith.mulf %219, %223 : vector<40x128xf32>
    %225 = arith.truncf %224 : vector<40x128xf32> to vector<40x128xbf16>
    %226 = vector.extract_strided_slice %204 {offsets = [0, 1], sizes = [40, 1], strides = [1, 1]} : vector<40x2xf32> to vector<40x1xf32>
    %227 = vector.extract_strided_slice %205 {offsets = [1, 0], sizes = [1, 128], strides = [1, 1]} : vector<2x128xf32> to vector<1x128xf32>
    %228 = vector.broadcast %226 : vector<40x1xf32> to vector<40x128xf32>
    %229 = vector.broadcast %227 : vector<1x128xf32> to vector<40x128xf32>
    %230 = arith.addf %228, %229 : vector<40x128xf32>
    %cst_56 = arith.constant 2.000000e-01 : f32
    %231 = vector.broadcast %cst_56 : f32 to vector<40x128xf32>
    %232 = arith.mulf %231, %230 : vector<40x128xf32>
    %233 = arith.maximumf %230, %232 : vector<40x128xf32>
    %234 = arith.addf %233, %1 : vector<40x128xf32>
    %cst_57 = arith.constant dense<0xFF800000> : vector<40xf32>
    %235 = vector.multi_reduction <maximumf>, %234, %cst_57 [1] : vector<40x128xf32> to vector<40xf32>
    %236 = vector.shape_cast %235 : vector<40xf32> to vector<40x1xf32>
    %237 = vector.broadcast %236 : vector<40x1xf32> to vector<40x128xf32>
    %238 = arith.subf %234, %237 : vector<40x128xf32>
    %239 = math.exp %238 : vector<40x128xf32>
    %cst_58 = arith.constant dense<0.000000e+00> : vector<40xf32>
    %240 = vector.multi_reduction <add>, %239, %cst_58 [1] : vector<40x128xf32> to vector<40xf32>
    %241 = vector.shape_cast %240 : vector<40xf32> to vector<40x1xf32>
    %242 = tpu.reciprocal %241 {approx = true} : vector<40x1xf32> -> vector<40x1xf32>
    %243 = vector.broadcast %242 : vector<40x1xf32> to vector<40x128xf32>
    %244 = arith.mulf %239, %243 : vector<40x128xf32>
    %245 = arith.truncf %244 : vector<40x128xf32> to vector<40x128xbf16>
    %246 = tpu.concatenate %225, %245 in 1 : vector<40x128xbf16>, vector<40x128xbf16> -> vector<40x256xbf16>
    %247 = tpu.concatenate %203, %203 in 0 : vector<128x16xbf16>, vector<128x16xbf16> -> vector<256x16xbf16>
    %248 = arith.mulf %247, %25 : vector<256x16xbf16>
    %cst_59 = arith.constant dense<0.000000e+00> : vector<40x16xf32>
    %249 = tpu.matmul %246, %248, %cst_59 {dimension_numbers = #tpu.dot_dimension_numbers<[1], [0], [0], [1], [0, 0, 1, 1], [], []>} : vector<40x256xbf16>, vector<256x16xbf16>, vector<40x16xf32> -> vector<40x16xf32>
    %250 = vector.broadcast %199 : vector<1x16xf32> to vector<40x16xf32>
    %251 = arith.addf %249, %250 : vector<40x16xf32>
    %252 = vector.extract_strided_slice %251 {offsets = [0, 0], sizes = [40, 8], strides = [1, 1]} : vector<40x16xf32> to vector<40x8xf32>
    %253 = vector.extract_strided_slice %251 {offsets = [0, 8], sizes = [40, 8], strides = [1, 1]} : vector<40x16xf32> to vector<40x8xf32>
    %254 = arith.addf %252, %253 : vector<40x8xf32>
    %cst_60 = arith.constant 5.000000e-01 : f32
    %255 = vector.broadcast %cst_60 : f32 to vector<40x8xf32>
    %256 = arith.mulf %255, %254 : vector<40x8xf32>
    %cst_61 = arith.constant 0.000000e+00 : f32
    %257 = vector.broadcast %cst_61 : f32 to vector<88x8xf32>
    %258 = tpu.concatenate %256, %257 in 0 : vector<40x8xf32>, vector<88x8xf32> -> vector<128x8xf32>
    %cst_62 = arith.constant dense<0.000000e+00> : vector<40x128xf32>
    %259 = tpu.matmul %256, %258, %cst_62 {dimension_numbers = #tpu.dot_dimension_numbers<[1], [1], [0], [0], [0, 0, 1, 0], [], []>} : vector<40x8xf32>, vector<128x8xf32>, vector<40x128xf32> -> vector<40x128xf32>
    %c0_63 = arith.constant 0 : index
    %c0_64 = arith.constant 0 : index
    %260 = vector.load %arg2[%c0_63, %c0_64] : memref<40x128xf32, #tpu.memory_space<vmem>>, vector<40x128xf32>
    tpu.vector_store %arg2[%c0_63, %c0_64], %259 {strides = array<i32>} : memref<40x128xf32, #tpu.memory_space<vmem>>, vector<40x128xf32>,
    return
  }
}

</mosaic_0001>

<bundles_post_ra>
// kernel: model_forward.1
= control target key start
LH: loop header
LB: loop body
LE: loop exit
PB: predicated region body
PF: predicated region fallthrough
CT: control target
= control target key end

     0   :  { %7 = vsyncpa [#allocation3], 0  ;;  %s3115_s9 = smov [#allocation2]   ;;  %s3508_s0 = inlined_call_operand.hbm [shape: bf16[352,128], index: 0, kind: input, shape index: {}]   ;;  %s3509_s1 = inlined_call_operand.vmem [shape: f32[8,32], index: 1, kind: input, shape index: {}]   ;;  %s3510_s2 = inlined_call_operand.vmem [shape: f32[40,128], index: 2, kind: output, shape index: {}]  }
   0x1   :  { %s13_s10 = sshll.u32 %s3115_s9, 4  ;;  %s3091_s13 = scalar_lea.hbm %s3508_s0, 2816  ;;  %s14_s10 = int_to_ptr.vmem [resolvable:$true] %s13_s10 }
   0x2   :  { %p3092_p0 = scmp.ne.s32.totalorder %s3508_s0, %s3091_s13  ;;  %p3095_p1 = scmp.lt.u32.totalorder %s3091_s13, %s3508_s0 }
   0x4   :  { %p3097_p2 = pnand %p3095_p1, %p3092_p0 }
   0x6   :  { %3100 = shalt.err (!%p3097_p2)
}
   0x7   :  { %s3101_s18 = scalar_lea.vmem %s14_s10, 2816  ;;  %p3106_p4 = scmp.lt.s32.totalorder %s14_s10, %s14_s10 }
   0x8   :  { %p3102_p3 = scmp.ne.s32.totalorder %s14_s10, %s3101_s18  ;;  %p3107_p5 = scmp.lt.s32.totalorder %s3101_s18, %s3101_s18 }
   0xa   :  { %p3108_p6 = por %p3107_p5, %p3106_p4 }
   0xc   :  { %p3109_p7 = pnand %p3108_p6, %p3102_p3 }
   0xe   :  { %3112 = shalt.err (!%p3109_p7)
}
   0xf   :  { %s3116_s19 = smov 64   ;;  %s3117_s20 = smov 4  }
  0x10   :  { %19 = dma.hbm_to_vmem [thread:$0]  %s3508_s0, 2816, %s14_s10, [#allocation3], %s3116_s19, %s3116_s19, %s3117_s20  }
  0x11   :  { %3113 = dma.done.wait [#allocation3], 2816  }
  0x12   :  { %3114 = vsyncadd [#allocation3], 4294964480  ;;  %vm413_vm0 = vcmask 1043456   ;;  %vm388_vm1 = vcmask 64512   ;;  %v345_v0 = vld [vmem:[#allocation2 + $0x58] sm:$0xf]  ;;  %v101_v13 = vlaneseq }
  0x13   :  { %2879 = vmatprep.subr.msk.bf16.mxu0 %vm413_vm0, %v345_v0  ;;  %v415_v1 = vsel %vm413_vm0, %v345_v0, 0  ;;  %v2917_v2 = vld [vmem:[#allocation2 + $0x18] sm:$0xff]   ;;  %v2918_v3 = vld [vmem:[#allocation2 + $0x20] sm:$0xff]   ;;  %v2919_v4 = vld [vmem:[#allocation2 + $0x28] sm:$0xff]   ;;  %v3118_v10 = vmov 33   ;;  %v3119_v11 = vmov 32  }
  0x14   :  { %2689 = vmatpush3.bf16.msra.mxu0 %v415_v1  ;;  %2690 = vmatprep.mubr.msk.bf16.mxu0 %vm388_vm1, %v2917_v2  ;;  %v2920_v5 = vld [vmem:[#allocation2 + $0x30] sm:$0xff]   ;;  %v2921_v6 = vld [vmem:[#allocation2 + $0x38] sm:$0xff]   ;;  %v2922_v7 = vld [vmem:[#allocation2 + $0x40] sm:$0xff]   ;;  %v3120_v12 = vmov 0.0   ;;  %vm3121_vm2 = vmmov 0   ;;  %v3168_v14 = vand.u32 127, %v101_v13 }
  0x15   :  { %v2923_v8 = vld [vmem:[#allocation2 + $0x48] sm:$0xff]   ;;  %v2924_v9 = vld [vmem:[#allocation2 + $0x50] sm:$0xff]   ;;  %2892 = vset.pattern.permute.xlu0 %v3118_v10  ;;  %2893 = vset.pattern.permute.xlu1 %v3119_v11  ;;  %vm3122_vm4 = vmmov 1   ;;  %vm522_vm8 = vcmask 261120   ;;  %vm1928_vm13 = vcmask 130048   ;;  %s3126_s30 = smov 120   ;;  %vm2873_vm14 = vmpackc.low %vm388_vm1, %vm388_vm1 }
  0x16   :  { %2706 = vmatprep.subr.bf16.mxu1 %v3120_v12  ;;  %2722 = vmatprep.mubr.msk.bf16.mxu1 %vm3121_vm2, %v3120_v12  ;;  %vm103_vm3 = vcmp.ge.s32.totalorder %v3168_v14, 16  ;;  %vm216_vm9 = vcmp.ge.s32.totalorder %v3168_v14, 8 }
  0x17   :  { %2691 = vmatmul.mubr.msk.bf16.vlgmr.msra.gmra.mrb[0].mxu0 %vm388_vm1, %v2918_v3  ;;  %vm120_vm5 = vmxor %vm3122_vm4, %vm103_vm3  ;;  %v346_v3 = vld [vmem:[#allocation2 + $0x90] sm:$0x1] }
  0x18   :  { %2694 = vmatprep.mubr.msk.bf16.mxu0 %vm388_vm1, %v2919_v4  ;;  %vm136_vm6 = vmxor %vm103_vm3, %vm3122_vm4 }
  0x19   :  { %vm152_vm7 = vmxor %vm120_vm5, %vm3122_vm4  ;;  %v168_v16 = vsel %vm136_vm6, 1.0, %v3120_v12 }
  0x1a   :  { %v184_v15 = vsel %vm152_vm7, 1.0, %v3120_v12  ;;  %v3178_v21 = vpack.c.bf16 %v168_v16, %v168_v16  ;;  %vm233_vm10 = vmxor %vm3122_vm4, %vm216_vm9 }
  0x1b   :  { %v3176_v20 = vpack.c.bf16 %v184_v15, %v184_v15  ;;  %vm249_vm11 = vmxor %vm216_vm9, %vm3122_vm4 }
  0x1c   :  { %vm265_vm12 = vmxor %vm233_vm10, %vm3122_vm4 }
  0x1f   :  { %2695 = vmatmul.mubr.msk.bf16.gmra.mrb[4].mxu0 %vm388_vm1, %v2920_v5 }
  0x20   :  { %2698 = vmatprep.mubr.msk.bf16.mxu0 %vm388_vm1, %v2921_v6 }
  0x27   :  { %2699 = vmatmul.mubr.msk.bf16.gmra.mrb[8].mxu0 %vm388_vm1, %v2922_v7 }
  0x28   :  { %2702 = vmatprep.mubr.msk.bf16.mxu0 %vm388_vm1, %v2923_v8  ;;  %v616_v8 = vshrl.u32 %v101_v13, 7 }
  0x2a   :  { %v3220_v15 = vsub.s32 1, %v616_v8 }
  0x2f   :  { %2703 = vmatmul.mubr.msk.bf16.gmra.mrb[12].mxu0 %vm388_vm1, %v2924_v9  ;;  %v3218_v9 = vsub.s32 0, %v616_v8 }
  0xea   :  { %v2692_v17 = vpop.f32.mrb[0].mxu0 }
  0xeb   :  { %v451_v18 = vpop.f32.mrb[1].mxu0 }
  0xec   :  { %592 = vperm.xlu1 %2893, %v451_v18   ;;  %688 = vperm.xlu0 %2892, %v451_v18   ;;  %v2693_v19 = vpop.f32.mrb[2].mxu0 }
  0xed   :  { %v515_v22 = vpack.c.bf16 %v2693_v19, %v2692_v17  ;;  %v454_v23 = vpop.f32.mrb[3].mxu0 }
  0xee   :  { %v514_v24 = vpack.c.bf16 %v454_v23, %v451_v18 }
  0xef   :  { %v788_v30 = vmul.bf16 %v515_v22, %v3176_v20  ;;  %v780_v34 = vmul.bf16 %v515_v22, %v3178_v21  ;;  %v530_v38 = vsel %vm522_vm8, %v515_v22, 0 }
  0xf0   :  { %597 = vperm.xlu1 %2893, %v454_v23   ;;  %692 = vperm.xlu0 %2892, %v454_v23   ;;  %v527_v25 = vsel %vm522_vm8, %v514_v24, 0  ;;  %v787_v26 = vmul.bf16 %v514_v24, %v3176_v20  ;;  %v779_v27 = vmul.bf16 %v514_v24, %v3178_v21  ;;  %v2459_v24 = vld [vmem:[#allocation2] sm:$0xff]  }
  0xf1   :  { %2707 = vmatpush3.bf16.xpose.msra.mxu1 %v527_v25  ;;  %v3224_v13 = vunpack.c.h.bf16 %v2459_v24 }
  0xf2   :  { %v2696_v28 = vpop.f32.mrb[4].mxu0  ;;  %2485 = vmatprep.subr.bf16.mxu0 %v787_v26  ;;  %2708 = vmatprep.subr.bf16.mxu1 %v3120_v12 }
  0xf3   :  { %v467_v29 = vpop.f32.mrb[5].mxu0  ;;  %2486 = vmatpush3.bf16.msra.mxu0 %v779_v27 }
  0xf4   :  { %2894 = vset.pattern.permute.xlu1 %v3118_v10  ;;  %696 = vperm.xlu0 %2892, %v2692_v17   ;;  %v2697_v31 = vpop.f32.mrb[6].mxu0 }
  0xf5   :  { %v517_v32 = vpack.c.bf16 %v2697_v31, %v2696_v28  ;;  %2487 = vmatprep.subr.bf16.mxu0 %v788_v30  ;;  %700 = vperm.xlu1 %2894, %v2693_v19   ;;  %v470_v33 = vpop.f32.mrb[7].mxu0 }
  0xf6   :  { %v516_v35 = vpack.c.bf16 %v470_v33, %v467_v29 }
  0xf7   :  { %2488 = vmatpush3.bf16.msra.mxu0 %v780_v34  ;;  %v790_v39 = vmul.bf16 %v517_v32, %v3176_v20  ;;  %v782_v42 = vmul.bf16 %v517_v32, %v3178_v21  ;;  %v536_v60 = vsel %vm522_vm8, %v517_v32, 0 }
  0xf8   :  { %v781_v36 = vmul.bf16 %v516_v35, %v3178_v21  ;;  %2895 = vset.pattern.permute.xlu0 %v3119_v11  ;;  %v789_v37 = vmul.bf16 %v516_v35, %v3176_v20  ;;  %v533_v49 = vsel %vm522_vm8, %v516_v35, 0 }
  0xf9   :  { %2896 = vset.pattern.permute.xlu1 %v3119_v11  ;;  %602 = vperm.xlu0 %2895, %v2692_v17  }
  0xfa   :  { %2709 = vmatpush3.bf16.xpose.msra.mxu1 %v530_v38  ;;  %607 = vperm.xlu1 %2896, %v2693_v19   ;;  %v2700_v40 = vpop.f32.mrb[8].mxu0 }
  0xfb   :  { %2489 = vmatprep.subr.bf16.mxu0 %v789_v37  ;;  %2710 = vmatprep.subr.bf16.mxu1 %v3120_v12  ;;  %v483_v41 = vpop.f32.mrb[9].mxu0 }
  0xfc   :  { %2490 = vmatpush3.bf16.msra.mxu0 %v781_v36  ;;  %v2701_v43 = vpop.f32.mrb[10].mxu0  ;;  %v3226_v36 = vunpack.c.l.bf16 %v2459_v24 }
  0xfd   :  { %612 = vperm.xlu0 %2895, %v467_v29   ;;  %2491 = vmatprep.subr.bf16.mxu0 %v790_v39  ;;  %v519_v44 = vpack.c.bf16 %v2701_v43, %v2700_v40  ;;  %v486_v45 = vpop.f32.mrb[11].mxu0 }
  0xfe   :  { %2897 = vset.pattern.permute.xlu1 %v3118_v10  ;;  %v518_v46 = vpack.c.bf16 %v486_v45, %v483_v41 }
  0xff   :  { %704 = vperm.xlu1 %2897, %v467_v29   ;;  %v792_v50 = vmul.bf16 %v519_v44, %v3176_v20  ;;  %v784_v53 = vmul.bf16 %v519_v44, %v3178_v21  ;;  %v542_v0 = vsel %vm522_vm8, %v519_v44, 0 }
 0x100   :  { %2492 = vmatpush3.bf16.msra.mxu0 %v782_v42  ;;  %v783_v47 = vmul.bf16 %v518_v46, %v3178_v21  ;;  %v791_v48 = vmul.bf16 %v518_v46, %v3176_v20  ;;  %v539_v63 = vsel %vm522_vm8, %v518_v46, 0  ;;  %v2466_v42 = vld [vmem:[#allocation2 + $0x8] sm:$0xff]  }
 0x101   :  { %2898 = vset.pattern.permute.xlu0 %v3118_v10 }
 0x102   :  { %2711 = vmatpush3.bf16.xpose.msra.mxu1 %v533_v49  ;;  %2493 = vmatprep.subr.bf16.mxu0 %v791_v48  ;;  %v2704_v51 = vpop.f32.mrb[12].mxu0 }
 0x103   :  { %2712 = vmatprep.subr.bf16.mxu1 %v3120_v12  ;;  %v499_v52 = vpop.f32.mrb[13].mxu0 }
 0x104   :  { %2494 = vmatpush3.bf16.msra.mxu0 %v783_v47  ;;  %v2705_v54 = vpop.f32.mrb[14].mxu0 }
 0x105   :  { %2495 = vmatprep.subr.bf16.mxu0 %v792_v50  ;;  %v521_v55 = vpack.c.bf16 %v2705_v54, %v2704_v51  ;;  %v502_v56 = vpop.f32.mrb[15].mxu0  ;;  %v3232_v54 = vunpack.c.l.bf16 %v2466_v42 }
 0x106   :  { %v520_v57 = vpack.c.bf16 %v502_v56, %v499_v52 }
 0x107   :  { %v794_v61 = vmul.bf16 %v521_v55, %v3176_v20  ;;  %v786_v62 = vmul.bf16 %v521_v55, %v3178_v21  ;;  %v548_v2 = vsel %vm522_vm8, %v521_v55, 0 }
 0x108   :  { %2496 = vmatpush3.bf16.msra.mxu0 %v784_v53  ;;  %v785_v58 = vmul.bf16 %v520_v57, %v3178_v21  ;;  %v793_v59 = vmul.bf16 %v520_v57, %v3176_v20  ;;  %v545_v1 = vsel %vm522_vm8, %v520_v57, 0  ;;  %v3230_v53 = vunpack.c.h.bf16 %v2466_v42 }
 0x10a   :  { %2713 = vmatpush3.bf16.xpose.msra.mxu1 %v536_v60  ;;  %2497 = vmatprep.subr.bf16.mxu0 %v793_v59 }
 0x10b   :  { %2714 = vmatprep.subr.bf16.mxu1 %v3120_v12 }
 0x10c   :  { %2498 = vmatpush3.bf16.msra.mxu0 %v785_v58 }
 0x10d   :  { %2499 = vmatprep.subr.bf16.mxu0 %v794_v61 }
 0x110   :  { %2500 = vmatpush3.bf16.msra.mxu0 %v786_v62 }
 0x112   :  { %2715 = vmatpush3.bf16.xpose.msra.mxu1 %v539_v63 }
 0x113   :  { %2716 = vmatprep.subr.bf16.mxu1 %v3120_v12 }
 0x11a   :  { %2717 = vmatpush3.bf16.xpose.msra.mxu1 %v542_v0 }
 0x11b   :  { %2718 = vmatprep.subr.bf16.mxu1 %v3120_v12 }
 0x122   :  { %2719 = vmatpush3.bf16.xpose.msra.mxu1 %v545_v1 }
 0x123   :  { %2720 = vmatprep.subr.bf16.mxu1 %v3120_v12 }
 0x12a   :  { %2721 = vmatpush3.bf16.xpose.msra.mxu1 %v548_v2 }
 0x131   :  { %2723 = vmatmul.mubr.msk.bf16.vlgmr.msra.gmra.mrb[0].mxu1 %vm522_vm8, %v346_v3  ;;  %v30_v3 = vld [vmem:[#allocation2 + $0x10] sm:$0xf] }
 0x16b   :  { %v593_v4 = vpop.permute.xlu1 %592  ;;  %v689_v5 = vpop.permute.xlu0 %688 }
 0x16f   :  { %v598_v6 = vpop.permute.xlu1 %597  ;;  %v693_v7 = vpop.permute.xlu0 %692 }
 0x173   :  { %v697_v16 = vpop.permute.xlu0 %696 }
 0x174   :  { %v701_v17 = vpop.permute.xlu1 %700 }
 0x178   :  { %v603_v33 = vpop.permute.xlu0 %602 }
 0x179   :  { %v608_v34 = vpop.permute.xlu1 %607 }
 0x17c   :  { %v613_v51 = vpop.permute.xlu0 %612 }
 0x17e   :  { %v705_v52 = vpop.permute.xlu1 %704 }
 0x204   :  { %v584_v18 = vpop.f32.mrb[0].mxu1 }
 0x205   :  { %v618_v19 = vrot.slane %v584_v18, %v3218_v9  ;;  %v710_v22 = vrot.slane %v584_v18, %v3220_v15  ;;  %v2724_v23 = vpop.f32.mrb[1].mxu1 }
 0x206   :  { %v587_v25 = vpop.f32.mrb[2].mxu1 }
 0x207   :  { %v2725_v26 = vpop.f32.mrb[3].mxu1  ;;  %v712_v27 = vadd.f32 %v710_v22, %v693_v7  ;;  %v711_v28 = vadd.f32 %v710_v22, %v689_v5  ;;  %v620_v29 = vadd.f32 %v618_v19, %v598_v6  ;;  %v619_v30 = vadd.f32 %v618_v19, %v593_v4 }
 0x208   :  { %v714_v31 = vadd.f32 %v710_v22, %v701_v17  ;;  %v713_v32 = vadd.f32 %v710_v22, %v697_v16  ;;  %v622_v45 = vadd.f32 %v618_v19, %v608_v34  ;;  %v621_v46 = vadd.f32 %v618_v19, %v603_v33 }
 0x209   :  { %v717_v35 = vmul.f32 0.2, %v712_v27  ;;  %v716_v37 = vmul.f32 0.2, %v711_v28  ;;  %v625_v38 = vmul.f32 0.2, %v620_v29  ;;  %v623_v57 = vadd.f32 %v618_v19, %v613_v51 }
 0x20a   :  { %v624_v39 = vmul.f32 0.2, %v619_v30  ;;  %v719_v43 = vmul.f32 0.2, %v714_v31  ;;  %v718_v44 = vmul.f32 0.2, %v713_v32  ;;  %v715_v58 = vadd.f32 %v710_v22, %v705_v52 }
 0x20b   :  { %v722_v40 = vmax.f32 %v712_v27, %v717_v35  ;;  %v721_v41 = vmax.f32 %v711_v28, %v716_v37  ;;  %v630_v49 = vmax.f32 %v620_v29, %v625_v38  ;;  %v627_v56 = vmul.f32 0.2, %v622_v45 }
 0x20c   :  { %v629_v50 = vmax.f32 %v619_v30, %v624_v39  ;;  %v724_v55 = vmax.f32 %v714_v31, %v719_v43  ;;  %v723_v61 = vmax.f32 %v713_v32, %v718_v44  ;;  %v626_v62 = vmul.f32 0.2, %v621_v46 }
 0x20d   :  { %v727_v47 = vadd.f32 %v3224_v13, %v722_v40  ;;  %v726_v48 = vadd.f32 %v3226_v36, %v721_v41  ;;  %v635_v59 = vadd.f32 %v3224_v13, %v630_v49  ;;  %v632_v0 = vmax.f32 %v622_v45, %v627_v56 }
 0x20e   :  { %v634_v60 = vadd.f32 %v3226_v36, %v629_v50  ;;  %v729_v63 = vadd.f32 %v3230_v53, %v724_v55  ;;  %v728_v1 = vadd.f32 %v3232_v54, %v723_v61  ;;  %v631_v2 = vmax.f32 %v621_v46, %v626_v62 }
 0x20f   :  { %733 = vmax.xlane.f32.xlu0 %v727_v47  ;;  %731 = vmax.xlane.f32.xlu1 %v726_v48  ;;  %v628_v4 = vmul.f32 0.2, %v623_v57  ;;  %v720_v5 = vmul.f32 0.2, %v715_v58  ;;  %v3238_v6 = vunpack.c.l.bf16 %v30_v3  ;;  %v637_v7 = vadd.f32 %v3230_v53, %v632_v0 }
 0x210   :  { %v636_v8 = vadd.f32 %v3232_v54, %v631_v2 }
 0x211   :  { %v633_v16 = vmax.f32 %v623_v57, %v628_v4  ;;  %v725_v17 = vmax.f32 %v715_v58, %v720_v5 }
 0x213   :  { %641 = vmax.xlane.f32.xlu1 %v635_v59  ;;  %639 = vmax.xlane.f32.xlu0 %v634_v60  ;;  %v638_v18 = vadd.f32 %v633_v16, %v3238_v6  ;;  %v730_v19 = vadd.f32 %v725_v17, %v3238_v6 }
 0x217   :  { %737 = vmax.xlane.f32.xlu1 %v729_v63  ;;  %735 = vmax.xlane.f32.xlu0 %v728_v1 }
 0x21b   :  { %645 = vmax.xlane.f32.xlu1 %v637_v7  ;;  %643 = vmax.xlane.f32.xlu0 %v636_v8 }
 0x21f   :  { %647 = vmax.xlane.f32.xlu1 %v638_v18  ;;  %739 = vmax.xlane.f32.xlu0 %v730_v19 }
 0x29c   :  { %v734_v22 = vpop.xlane.xlu0 %733  ;;  %v732_v23 = vpop.xlane.xlu1 %731 }
 0x29d   :  { %v742_v24 = vsub.f32 %v727_v47, %v734_v22  ;;  %v741_v25 = vsub.f32 %v726_v48, %v732_v23 }
 0x29f   :  { %v748_v26 = vmul.f32 1.442695, %v742_v24  ;;  %v746_v27 = vmul.f32 1.442695, %v741_v25 }
 0x2a0   :  { %v642_v28 = vpop.xlane.xlu1 %641  ;;  %v640_v29 = vpop.xlane.xlu0 %639 }
 0x2a1   :  { %2931 = vpow2.f32 %v748_v26  ;;  %v650_v30 = vsub.f32 %v635_v59, %v642_v28  ;;  %v649_v31 = vsub.f32 %v634_v60, %v640_v29 }
 0x2a2   :  { %2933 = vpow2.f32 %v746_v27 }
 0x2a3   :  { %v656_v32 = vmul.f32 1.442695, %v650_v30  ;;  %v654_v33 = vmul.f32 1.442695, %v649_v31 }
 0x2a4   :  { %v738_v34 = vpop.xlane.xlu1 %737  ;;  %v736_v35 = vpop.xlane.xlu0 %735 }
 0x2a5   :  { %2935 = vpow2.f32 %v656_v32  ;;  %v744_v37 = vsub.f32 %v729_v63, %v738_v34  ;;  %v743_v38 = vsub.f32 %v728_v1, %v736_v35  ;;  %v2925_v1 = vld [vmem:[#allocation2 + $0x60] sm:$0xff]  }
 0x2a6   :  { %2937 = vpow2.f32 %v654_v33  ;;  %2726 = vmatprep.subr.bf16.mxu0 %v2925_v1 }
 0x2a7   :  { %v752_v39 = vmul.f32 1.442695, %v744_v37  ;;  %v750_v40 = vmul.f32 1.442695, %v743_v38 }
 0x2a8   :  { %v646_v41 = vpop.xlane.xlu1 %645  ;;  %v644_v42 = vpop.xlane.xlu0 %643 }
 0x2a9   :  { %2939 = vpow2.f32 %v752_v39  ;;  %v652_v43 = vsub.f32 %v637_v7, %v646_v41  ;;  %v651_v44 = vsub.f32 %v636_v8, %v644_v42 }
 0x2aa   :  { %2941 = vpow2.f32 %v750_v40 }
 0x2ab   :  { %v2932_v45 = vpop.eup %2931  ;;  %v660_v46 = vmul.f32 1.442695, %v652_v43  ;;  %v658_v47 = vmul.f32 1.442695, %v651_v44 }
 0x2ac   :  { %v2934_v48 = vpop.eup %2933  ;;  %758 = vadd.xlane.f32.xlu1 %v2932_v45  ;;  %v648_v49 = vpop.xlane.xlu1 %647 }
 0x2ad   :  { %v740_v50 = vpop.xlane.xlu0 %739  ;;  %2943 = vpow2.f32 %v660_v46  ;;  %v653_v51 = vsub.f32 %v638_v18, %v648_v49  ;;  %756 = vadd.xlane.f32.xlu0 %v2934_v48  ;;  %v2926_v49 = vld [vmem:[#allocation2 + $0x68] sm:$0xff]  }
 0x2ae   :  { %v745_v52 = vsub.f32 %v730_v19, %v740_v50  ;;  %2945 = vpow2.f32 %v658_v47 }
 0x2af   :  { %v2936_v55 = vpop.eup %2935  ;;  %v662_v56 = vmul.f32 1.442695, %v653_v51 }
 0x2b0   :  { %v754_v57 = vmul.f32 1.442695, %v745_v52  ;;  %v2938_v58 = vpop.eup %2937  ;;  %666 = vadd.xlane.f32.xlu1 %v2936_v55 }
 0x2b1   :  { %2947 = vpow2.f32 %v662_v56  ;;  %664 = vadd.xlane.f32.xlu0 %v2938_v58  ;;  %v2426_v56 = vld [vmem:[%s3509_s1] ss:$0 sm:$0xff] }
 0x2b2   :  { %2949 = vpow2.f32 %v754_v57 }
 0x2b3   :  { %v2940_v59 = vpop.eup %2939 }
 0x2b4   :  { %v2942_v60 = vpop.eup %2941  ;;  %762 = vadd.xlane.f32.xlu1 %v2940_v59 }
 0x2b5   :  { %760 = vadd.xlane.f32.xlu0 %v2942_v60 }
 0x2b7   :  { %v2944_v61 = vpop.eup %2943 }
 0x2b8   :  { %v2946_v62 = vpop.eup %2945  ;;  %670 = vadd.xlane.f32.xlu1 %v2944_v61 }
 0x2b9   :  { %668 = vadd.xlane.f32.xlu0 %v2946_v62 }
 0x2bb   :  { %v2948_v63 = vpop.eup %2947 }
 0x2bc   :  { %v2950_v0 = vpop.eup %2949  ;;  %672 = vadd.xlane.f32.xlu1 %v2948_v63 }
 0x2bd   :  { %764 = vadd.xlane.f32.xlu0 %v2950_v0 }
 0x339   :  { %v759_v2 = vpop.xlane.xlu1 %758 }
 0x33a   :  { %2951 = vrcp.f32 %v759_v2  ;;  %v757_v3 = vpop.xlane.xlu0 %756 }
 0x33b   :  { %2953 = vrcp.f32 %v757_v3 }
 0x33d   :  { %v667_v4 = vpop.xlane.xlu1 %666 }
 0x33e   :  { %2955 = vrcp.f32 %v667_v4  ;;  %v665_v5 = vpop.xlane.xlu0 %664 }
 0x33f   :  { %2957 = vrcp.f32 %v665_v5 }
 0x341   :  { %v763_v7 = vpop.xlane.xlu1 %762 }
 0x342   :  { %2959 = vrcp.f32 %v763_v7  ;;  %v761_v8 = vpop.xlane.xlu0 %760 }
 0x343   :  { %2961 = vrcp.f32 %v761_v8 }
 0x344   :  { %v2952_v16 = vpop.eup %2951 }
 0x345   :  { %v2954_v17 = vpop.eup %2953  ;;  %v671_v18 = vpop.xlane.xlu1 %670  ;;  %v772_v19 = vmul.f32 %v2952_v16, %v2932_v45 }
 0x346   :  { %2963 = vrcp.f32 %v671_v18  ;;  %v669_v22 = vpop.xlane.xlu0 %668  ;;  %v771_v23 = vmul.f32 %v2954_v17, %v2934_v48 }
 0x347   :  { %2965 = vrcp.f32 %v669_v22 }
 0x348   :  { %v2956_v24 = vpop.eup %2955  ;;  %v776_v25 = vpack.c.bf16 %v772_v19, %v771_v23 }
 0x349   :  { %v2958_v26 = vpop.eup %2957  ;;  %v680_v27 = vmul.f32 %v2956_v24, %v2936_v55  ;;  %v673_v28 = vpop.xlane.xlu1 %672  ;;  %v3123_v24 = vmov 0.0|0.0  }
 0x34a   :  { %v679_v29 = vmul.f32 %v2958_v26, %v2938_v58  ;;  %2967 = vrcp.f32 %v673_v28  ;;  %831 = vmatprep.mubr.bf16.mxu0 %v776_v25  ;;  %v765_v30 = vpop.xlane.xlu0 %764 }
 0x34b   :  { %2969 = vrcp.f32 %v765_v30 }
 0x34c   :  { %v2960_v31 = vpop.eup %2959  ;;  %v684_v32 = vpack.c.bf16 %v680_v27, %v679_v29 }
 0x34d   :  { %v2962_v33 = vpop.eup %2961  ;;  %v774_v34 = vmul.f32 %v2960_v31, %v2940_v59 }
 0x34e   :  { %832 = vmatmul.mubr.bf16.vlgmr.msra.gmra.mrb[16].mxu0 %v684_v32  ;;  %v773_v35 = vmul.f32 %v2962_v33, %v2942_v60 }
 0x34f   :  { %2727 = vmatpush3.bf16.msra.mxu0 %v2925_v1 }
 0x350   :  { %v2964_v37 = vpop.eup %2963  ;;  %v777_v38 = vpack.c.bf16 %v774_v34, %v773_v35  ;;  %2728 = vmatprep.subr.bf16.mxu0 %v2926_v49 }
 0x351   :  { %v2966_v39 = vpop.eup %2965  ;;  %v682_v40 = vmul.f32 %v2964_v37, %v2944_v61 }
 0x352   :  { %839 = vmatprep.mubr.bf16.mxu0 %v777_v38  ;;  %v681_v41 = vmul.f32 %v2966_v39, %v2946_v62 }
 0x353   :  { %2729 = vmatpush3.bf16.msra.mxu0 %v2926_v49 }
 0x354   :  { %v2968_v42 = vpop.eup %2967  ;;  %v685_v43 = vpack.c.bf16 %v682_v40, %v681_v41  ;;  %2746 = vmatprep.subr.bf16.mxu0 %v3120_v12 }
 0x355   :  { %v2970_v44 = vpop.eup %2969  ;;  %v683_v47 = vmul.f32 %v2968_v42, %v2948_v63 }
 0x356   :  { %840 = vmatmul.mubr.bf16.gmra.mrb[20].mxu0 %v685_v43  ;;  %v775_v45 = vmul.f32 %v2970_v44, %v2950_v0 }
 0x357   :  { %v686_v48 = vpack.c.bf16 %v683_v47, %v683_v47 }
 0x358   :  { %v778_v46 = vpack.c.bf16 %v775_v45, %v775_v45 }
 0x35a   :  { %847 = vmatprep.mubr.bf16.mxu0 %v778_v46 }
 0x35e   :  { %848 = vmatmul.mubr.bf16.gmra.mrb[24].mxu0 %v686_v48 }
 0x421   :  { %v2501_v50 = vpop.f32.mrb[16].mxu0 }
 0x422   :  { %v2502_v51 = vpop.f32.mrb[17].mxu0 }
 0x423   :  { %v2503_v52 = vadd.f32 %v2502_v51, %v2501_v50  ;;  %v2504_v55 = vpop.f32.mrb[18].mxu0 }
 0x424   :  { %v2505_v57 = vpop.f32.mrb[19].mxu0 }
 0x425   :  { %v2506_v58 = vadd.f32 %v2505_v57, %v2504_v55  ;;  %v834_v59 = vadd.f32 %v2503_v52, %v2426_v56 }
 0x427   :  { %v837_v60 = vadd.f32 %v2506_v58, %v2426_v56 }
 0x429   :  { %v861_v61 = vpack.c.bf16 %v837_v60, %v834_v59  ;;  %v2507_v62 = vpop.f32.mrb[20].mxu0 }
 0x42a   :  { %v2508_v63 = vpop.f32.mrb[21].mxu0 }
 0x42b   :  { %v2509_v0 = vadd.f32 %v2508_v63, %v2507_v62  ;;  %v2510_v1 = vpop.f32.mrb[22].mxu0  ;;  %2730 = vmatprep.mubr.msk.bf16.mxu0 %vm522_vm8, %v861_v61 }
 0x42c   :  { %v2511_v2 = vpop.f32.mrb[23].mxu0 }
 0x42d   :  { %v2512_v3 = vadd.f32 %v2511_v2, %v2510_v1  ;;  %v842_v4 = vadd.f32 %v2509_v0, %v2426_v56 }
 0x42f   :  { %v845_v5 = vadd.f32 %v2512_v3, %v2426_v56 }
 0x431   :  { %v862_v7 = vpack.c.bf16 %v845_v5, %v842_v4  ;;  %v2513_v8 = vpop.f32.mrb[24].mxu0 }
 0x432   :  { %v2514_v16 = vpop.f32.mrb[25].mxu0 }
 0x433   :  { %v2515_v17 = vadd.f32 %v2514_v16, %v2513_v8  ;;  %v2516_v18 = vpop.f32.mrb[26].mxu0  ;;  %2731 = vmatmul.mubr.msk.bf16.vlgmr.msra.gmra.mrb[28].mxu0 %vm522_vm8, %v862_v7 }
 0x434   :  { %v2517_v19 = vpop.f32.mrb[27].mxu0 }
 0x435   :  { %v850_v22 = vadd.f32 %v2515_v17, %v2426_v56 }
 0x437   :  { %v863_v23 = vpack.c.bf16 %v3120_v12, %v850_v22  ;;  %v859_v22 = vld [vmem:[#allocation2 + $0x98] sm:$0x1] }
 0x439   :  { %2734 = vmatprep.mubr.msk.bf16.mxu0 %vm522_vm8, %v863_v23 }
 0x43b   :  { %2735 = vmatmul.mubr.bf16.gmra.mrb[32].mxu0 %v3123_v24 }
 0x43c   :  { %2738 = vmatprep.mubr.bf16.mxu0 %v3123_v24 }
 0x443   :  { %2739 = vmatmul.mubr.bf16.gmra.mrb[36].mxu0 %v3123_v24 }
 0x444   :  { %2742 = vmatprep.mubr.bf16.mxu0 %v3123_v24 }
 0x44b   :  { %2743 = vmatmul.mubr.bf16.gmra.mrb[40].mxu0 %v3123_v24 }
 0x44c   :  { %2762 = vmatprep.mubr.msk.bf16.mxu0 %vm3121_vm2, %v3120_v12 }
 0x506   :  { %v2732_v25 = vpop.f32.mrb[28].mxu0 }
 0x507   :  { %1167 = vperm.xlu1 %2897, %v2732_v25   ;;  %v923_v26 = vpop.f32.mrb[29].mxu0 }
 0x508   :  { %1159 = vperm.xlu0 %2898, %v923_v26   ;;  %v3259_v27 = vpop.f32.mrb[30].mxu0 }
 0x509   :  { %v987_v28 = vpack.c.bf16 %v3259_v27, %v2732_v25  ;;  %v926_v29 = vpop.f32.mrb[31].mxu0 }
 0x50a   :  { %v986_v30 = vpack.c.bf16 %v926_v29, %v923_v26 }
 0x50b   :  { %2899 = vset.pattern.permute.xlu1 %v3119_v11  ;;  %v1259_v35 = vmul.bf16 %v987_v28, %v3176_v20  ;;  %v1251_v41 = vmul.bf16 %v987_v28, %v3178_v21  ;;  %v1001_v44 = vsel %vm522_vm8, %v987_v28, 0 }
 0x50c   :  { %1063 = vperm.xlu1 %2899, %v923_v26   ;;  %v998_v31 = vsel %vm522_vm8, %v986_v30, 0  ;;  %v1258_v32 = vmul.bf16 %v986_v30, %v3176_v20  ;;  %v1250_v33 = vmul.bf16 %v986_v30, %v3178_v21  ;;  %2903 = vset.pattern.permute.xlu0 %v3119_v11 }
 0x50d   :  { %2747 = vmatpush3.bf16.xpose.msra.mxu0 %v998_v31 }
 0x50e   :  { %v2736_v34 = vpop.f32.mrb[32].mxu0  ;;  %2538 = vmatprep.subr.bf16.mxu1 %v1258_v32  ;;  %2748 = vmatprep.subr.bf16.mxu0 %v3120_v12 }
 0x50f   :  { %v939_v37 = vpop.f32.mrb[33].mxu0  ;;  %2539 = vmatpush3.bf16.msra.mxu1 %v1250_v33 }
 0x510   :  { %2900 = vset.pattern.permute.xlu1 %v3118_v10  ;;  %v2737_v38 = vpop.f32.mrb[34].mxu0  ;;  %2540 = vmatprep.subr.bf16.mxu1 %v1259_v35 }
 0x511   :  { %v989_v39 = vpack.c.bf16 %v2737_v38, %v2736_v34  ;;  %1171 = vperm.xlu1 %2900, %v3259_v27   ;;  %v942_v40 = vpop.f32.mrb[35].mxu0  ;;  %1083 = vperm.xlu0 %2903, %v939_v37  }
 0x512   :  { %v988_v42 = vpack.c.bf16 %v942_v40, %v939_v37 }
 0x513   :  { %2541 = vmatpush3.bf16.msra.mxu1 %v1251_v41  ;;  %v1261_v46 = vmul.bf16 %v989_v39, %v3176_v20  ;;  %v1253_v48 = vmul.bf16 %v989_v39, %v3178_v21  ;;  %v1007_v3 = vsel %vm522_vm8, %v989_v39, 0 }
 0x514   :  { %v1252_v43 = vmul.bf16 %v988_v42, %v3178_v21  ;;  %v1260_v45 = vmul.bf16 %v988_v42, %v3176_v20  ;;  %v1004_v56 = vsel %vm522_vm8, %v988_v42, 0 }
 0x515   :  { %1163 = vperm.xlu1 %2900, %v926_v29   ;;  %2749 = vmatpush3.bf16.xpose.msra.mxu0 %v1001_v44 }
 0x516   :  { %2542 = vmatprep.subr.bf16.mxu1 %v1260_v45  ;;  %2750 = vmatprep.subr.bf16.mxu0 %v3120_v12  ;;  %v2740_v47 = vpop.f32.mrb[36].mxu0 }
 0x517   :  { %2543 = vmatpush3.bf16.msra.mxu1 %v1252_v43  ;;  %v955_v49 = vpop.f32.mrb[37].mxu0  ;;  %2904 = vset.pattern.permute.xlu0 %v3118_v10 }
 0x518   :  { %2544 = vmatprep.subr.bf16.mxu1 %v1261_v46  ;;  %v2741_v50 = vpop.f32.mrb[38].mxu0 }
 0x519   :  { %2901 = vset.pattern.permute.xlu1 %v3119_v11  ;;  %v991_v51 = vpack.c.bf16 %v2741_v50, %v2740_v47  ;;  %v958_v52 = vpop.f32.mrb[39].mxu0 }
 0x51a   :  { %1068 = vperm.xlu1 %2901, %v926_v29   ;;  %v990_v55 = vpack.c.bf16 %v958_v52, %v955_v49 }
 0x51b   :  { %2545 = vmatpush3.bf16.msra.mxu1 %v1253_v48  ;;  %v1263_v59 = vmul.bf16 %v991_v51, %v3176_v20  ;;  %v1255_v62 = vmul.bf16 %v991_v51, %v3178_v21  ;;  %v1013_v17 = vsel %vm522_vm8, %v991_v51, 0 }
 0x51c   :  { %v1254_v57 = vmul.bf16 %v990_v55, %v3178_v21  ;;  %v1262_v58 = vmul.bf16 %v990_v55, %v3176_v20  ;;  %v1010_v16 = vsel %vm522_vm8, %v990_v55, 0 }
 0x51d   :  { %2751 = vmatpush3.bf16.xpose.msra.mxu0 %v1004_v56 }
 0x51e   :  { %1073 = vperm.xlu1 %2901, %v2732_v25   ;;  %2752 = vmatprep.subr.bf16.mxu0 %v3120_v12  ;;  %v2744_v60 = vpop.f32.mrb[40].mxu0 }
 0x51f   :  { %2546 = vmatprep.subr.bf16.mxu1 %v1262_v58  ;;  %v971_v61 = vpop.f32.mrb[41].mxu0 }
 0x520   :  { %2547 = vmatpush3.bf16.msra.mxu1 %v1254_v57  ;;  %v2745_v63 = vpop.f32.mrb[42].mxu0 }
 0x521   :  { %2548 = vmatprep.subr.bf16.mxu1 %v1263_v59  ;;  %v993_v0 = vpack.c.bf16 %v2745_v63, %v2744_v60  ;;  %v974_v1 = vpop.f32.mrb[43].mxu0 }
 0x522   :  { %1078 = vperm.xlu1 %2901, %v3259_v27   ;;  %v992_v2 = vpack.c.bf16 %v974_v1, %v971_v61 }
 0x523   :  { %v1265_v7 = vmul.bf16 %v993_v0, %v3176_v20  ;;  %v1257_v8 = vmul.bf16 %v993_v0, %v3178_v21  ;;  %v1019_v19 = vsel %vm522_vm8, %v993_v0, 0 }
 0x524   :  { %2549 = vmatpush3.bf16.msra.mxu1 %v1255_v62  ;;  %v1256_v4 = vmul.bf16 %v992_v2, %v3178_v21  ;;  %v1264_v5 = vmul.bf16 %v992_v2, %v3176_v20  ;;  %v1016_v18 = vsel %vm522_vm8, %v992_v2, 0 }
 0x525   :  { %2753 = vmatpush3.bf16.xpose.msra.mxu0 %v1007_v3 }
 0x526   :  { %2902 = vset.pattern.permute.xlu1 %v3118_v10  ;;  %2754 = vmatprep.subr.bf16.mxu0 %v3120_v12 }
 0x527   :  { %1175 = vperm.xlu1 %2902, %v939_v37   ;;  %2550 = vmatprep.subr.bf16.mxu1 %v1264_v5 }
 0x528   :  { %2551 = vmatpush3.bf16.msra.mxu1 %v1256_v4 }
 0x529   :  { %2552 = vmatprep.subr.bf16.mxu1 %v1265_v7 }
 0x52c   :  { %2553 = vmatpush3.bf16.msra.mxu1 %v1257_v8 }
 0x52d   :  { %2755 = vmatpush3.bf16.xpose.msra.mxu0 %v1010_v16 }
 0x52e   :  { %2756 = vmatprep.subr.bf16.mxu0 %v3120_v12 }
 0x535   :  { %2757 = vmatpush3.bf16.xpose.msra.mxu0 %v1013_v17 }
 0x536   :  { %2758 = vmatprep.subr.bf16.mxu0 %v3120_v12 }
 0x53d   :  { %2759 = vmatpush3.bf16.xpose.msra.mxu0 %v1016_v18 }
 0x53e   :  { %2760 = vmatprep.subr.bf16.mxu0 %v3120_v12 }
 0x545   :  { %2761 = vmatpush3.bf16.xpose.msra.mxu0 %v1019_v19 }
 0x54c   :  { %2763 = vmatmul.mubr.msk.bf16.vlgmr.msra.gmra.mrb[44].mxu0 %vm522_vm8, %v859_v22 }
 0x586   :  { %v1168_v23 = vpop.permute.xlu1 %1167 }
 0x587   :  { %v1160_v34 = vpop.permute.xlu0 %1159 }
 0x58b   :  { %v1064_v25 = vpop.permute.xlu1 %1063 }
 0x590   :  { %v1172_v26 = vpop.permute.xlu1 %1171  ;;  %v1084_v61 = vpop.permute.xlu0 %1083 }
 0x594   :  { %v1164_v27 = vpop.permute.xlu1 %1163 }
 0x599   :  { %v1069_v28 = vpop.permute.xlu1 %1068 }
 0x59d   :  { %v1074_v29 = vpop.permute.xlu1 %1073 }
 0x5a1   :  { %v1079_v44 = vpop.permute.xlu1 %1078 }
 0x5a6   :  { %v1176_v62 = vpop.permute.xlu1 %1175 }
 0x61f   :  { %v1055_v30 = vpop.f32.mrb[44].mxu0 }
 0x620   :  { %v1089_v31 = vrot.slane %v1055_v30, %v3218_v9  ;;  %v1181_v32 = vrot.slane %v1055_v30, %v3220_v15  ;;  %v2764_v33 = vpop.f32.mrb[45].mxu0 }
 0x621   :  { %v1058_v35 = vpop.f32.mrb[46].mxu0 }
 0x622   :  { %v2765_v37 = vpop.f32.mrb[47].mxu0  ;;  %v1183_v38 = vadd.f32 %v1181_v32, %v1164_v27  ;;  %v1182_v39 = vadd.f32 %v1181_v32, %v1160_v34  ;;  %v1091_v40 = vadd.f32 %v1089_v31, %v1069_v28  ;;  %v1090_v41 = vadd.f32 %v1089_v31, %v1064_v25 }
 0x623   :  { %v1185_v42 = vadd.f32 %v1181_v32, %v1172_v26  ;;  %v1184_v43 = vadd.f32 %v1181_v32, %v1168_v23  ;;  %v1093_v55 = vadd.f32 %v1089_v31, %v1079_v44  ;;  %v1092_v56 = vadd.f32 %v1089_v31, %v1074_v29 }
 0x624   :  { %v1188_v45 = vmul.f32 0.2, %v1183_v38  ;;  %v1187_v46 = vmul.f32 0.2, %v1182_v39  ;;  %v1096_v47 = vmul.f32 0.2, %v1091_v40  ;;  %v1094_v1 = vadd.f32 %v1089_v31, %v1084_v61 }
 0x625   :  { %v1095_v48 = vmul.f32 0.2, %v1090_v41  ;;  %v1190_v51 = vmul.f32 0.2, %v1185_v42  ;;  %v1189_v52 = vmul.f32 0.2, %v1184_v43  ;;  %v1186_v2 = vadd.f32 %v1181_v32, %v1176_v62 }
 0x626   :  { %v1193_v49 = vmax.f32 %v1183_v38, %v1188_v45  ;;  %v1192_v50 = vmax.f32 %v1182_v39, %v1187_v46  ;;  %v1101_v59 = vmax.f32 %v1091_v40, %v1096_v47  ;;  %v1098_v0 = vmul.f32 0.2, %v1093_v55 }
 0x627   :  { %v1100_v60 = vmax.f32 %v1090_v41, %v1095_v48  ;;  %v1195_v63 = vmax.f32 %v1185_v42, %v1190_v51  ;;  %v1194_v5 = vmax.f32 %v1184_v43, %v1189_v52  ;;  %v1097_v7 = vmul.f32 0.2, %v1092_v56 }
 0x628   :  { %v1198_v57 = vadd.f32 %v3224_v13, %v1193_v49  ;;  %v1197_v58 = vadd.f32 %v3226_v36, %v1192_v50  ;;  %v1106_v3 = vadd.f32 %v3224_v13, %v1101_v59  ;;  %v1103_v16 = vmax.f32 %v1093_v55, %v1098_v0 }
 0x629   :  { %v1105_v4 = vadd.f32 %v3226_v36, %v1100_v60  ;;  %v1200_v8 = vadd.f32 %v3230_v53, %v1195_v63  ;;  %v1199_v17 = vadd.f32 %v3232_v54, %v1194_v5  ;;  %v1102_v18 = vmax.f32 %v1092_v56, %v1097_v7 }
 0x62a   :  { %1204 = vmax.xlane.f32.xlu0 %v1198_v57  ;;  %1202 = vmax.xlane.f32.xlu1 %v1197_v58  ;;  %v1099_v19 = vmul.f32 0.2, %v1094_v1  ;;  %v1191_v22 = vmul.f32 0.2, %v1186_v2  ;;  %v1108_v23 = vadd.f32 %v3230_v53, %v1103_v16 }
 0x62b   :  { %v1107_v25 = vadd.f32 %v3232_v54, %v1102_v18 }
 0x62c   :  { %v1104_v26 = vmax.f32 %v1094_v1, %v1099_v19  ;;  %v1196_v27 = vmax.f32 %v1186_v2, %v1191_v22 }
 0x62e   :  { %1112 = vmax.xlane.f32.xlu0 %v1106_v3  ;;  %1110 = vmax.xlane.f32.xlu1 %v1105_v4  ;;  %v1109_v28 = vadd.f32 %v1104_v26, %v3238_v6  ;;  %v1201_v29 = vadd.f32 %v1196_v27, %v3238_v6 }
 0x632   :  { %1208 = vmax.xlane.f32.xlu0 %v1200_v8  ;;  %1206 = vmax.xlane.f32.xlu1 %v1199_v17 }
 0x636   :  { %1116 = vmax.xlane.f32.xlu0 %v1108_v23  ;;  %1114 = vmax.xlane.f32.xlu1 %v1107_v25 }
 0x63a   :  { %1118 = vmax.xlane.f32.xlu0 %v1109_v28  ;;  %1210 = vmax.xlane.f32.xlu1 %v1201_v29 }
 0x6b7   :  { %v1205_v30 = vpop.xlane.xlu0 %1204  ;;  %v1203_v31 = vpop.xlane.xlu1 %1202 }
 0x6b8   :  { %v1213_v32 = vsub.f32 %v1198_v57, %v1205_v30  ;;  %v1212_v33 = vsub.f32 %v1197_v58, %v1203_v31 }
 0x6ba   :  { %v1219_v34 = vmul.f32 1.442695, %v1213_v32  ;;  %v1217_v35 = vmul.f32 1.442695, %v1212_v33 }
 0x6bb   :  { %v1113_v37 = vpop.xlane.xlu0 %1112  ;;  %v1111_v38 = vpop.xlane.xlu1 %1110 }
 0x6bc   :  { %2971 = vpow2.f32 %v1219_v34  ;;  %v1121_v39 = vsub.f32 %v1106_v3, %v1113_v37  ;;  %v1120_v40 = vsub.f32 %v1105_v4, %v1111_v38 }
 0x6bd   :  { %2973 = vpow2.f32 %v1217_v35 }
 0x6be   :  { %v1127_v41 = vmul.f32 1.442695, %v1121_v39  ;;  %v1125_v42 = vmul.f32 1.442695, %v1120_v40 }
 0x6bf   :  { %v1209_v43 = vpop.xlane.xlu0 %1208  ;;  %v1207_v44 = vpop.xlane.xlu1 %1206 }
 0x6c0   :  { %2975 = vpow2.f32 %v1127_v41  ;;  %v1215_v45 = vsub.f32 %v1200_v8, %v1209_v43  ;;  %v1214_v46 = vsub.f32 %v1199_v17, %v1207_v44  ;;  %v2927_v17 = vld [vmem:[#allocation2 + $0x70] sm:$0xff]  }
 0x6c1   :  { %2977 = vpow2.f32 %v1125_v42  ;;  %2766 = vmatprep.subr.bf16.mxu1 %v2927_v17 }
 0x6c2   :  { %v1223_v47 = vmul.f32 1.442695, %v1215_v45  ;;  %v1221_v48 = vmul.f32 1.442695, %v1214_v46 }
 0x6c3   :  { %v1117_v49 = vpop.xlane.xlu0 %1116  ;;  %v1115_v50 = vpop.xlane.xlu1 %1114 }
 0x6c4   :  { %2979 = vpow2.f32 %v1223_v47  ;;  %v1123_v51 = vsub.f32 %v1108_v23, %v1117_v49  ;;  %v1122_v52 = vsub.f32 %v1107_v25, %v1115_v50 }
 0x6c5   :  { %2981 = vpow2.f32 %v1221_v48 }
 0x6c6   :  { %v2972_v55 = vpop.eup %2971  ;;  %v1131_v56 = vmul.f32 1.442695, %v1123_v51  ;;  %v1129_v57 = vmul.f32 1.442695, %v1122_v52 }
 0x6c7   :  { %v2974_v58 = vpop.eup %2973  ;;  %1229 = vadd.xlane.f32.xlu0 %v2972_v55  ;;  %v1119_v59 = vpop.xlane.xlu0 %1118 }
 0x6c8   :  { %v1211_v60 = vpop.xlane.xlu1 %1210  ;;  %2983 = vpow2.f32 %v1131_v56  ;;  %v1124_v61 = vsub.f32 %v1109_v28, %v1119_v59  ;;  %1227 = vadd.xlane.f32.xlu1 %v2974_v58 }
 0x6c9   :  { %v1216_v62 = vsub.f32 %v1201_v29, %v1211_v60  ;;  %2985 = vpow2.f32 %v1129_v57  ;;  %v2928_v60 = vld [vmem:[#allocation2 + $0x78] sm:$0xff]  }
 0x6ca   :  { %v2976_v63 = vpop.eup %2975  ;;  %v1133_v0 = vmul.f32 1.442695, %v1124_v61 }
 0x6cb   :  { %v1225_v1 = vmul.f32 1.442695, %v1216_v62  ;;  %v2978_v2 = vpop.eup %2977  ;;  %1137 = vadd.xlane.f32.xlu0 %v2976_v63 }
 0x6cc   :  { %2987 = vpow2.f32 %v1133_v0  ;;  %1135 = vadd.xlane.f32.xlu1 %v2978_v2 }
 0x6cd   :  { %2989 = vpow2.f32 %v1225_v1  ;;  %v2433_v1 = vld [vmem:[%s3509_s1 + $0x1] ss:$0 sm:$0xff] }
 0x6ce   :  { %v2980_v3 = vpop.eup %2979 }
 0x6cf   :  { %v2982_v4 = vpop.eup %2981  ;;  %1233 = vadd.xlane.f32.xlu0 %v2980_v3 }
 0x6d0   :  { %1231 = vadd.xlane.f32.xlu1 %v2982_v4 }
 0x6d2   :  { %v2984_v5 = vpop.eup %2983 }
 0x6d3   :  { %v2986_v7 = vpop.eup %2985  ;;  %1141 = vadd.xlane.f32.xlu0 %v2984_v5 }
 0x6d4   :  { %1139 = vadd.xlane.f32.xlu1 %v2986_v7 }
 0x6d6   :  { %v2988_v8 = vpop.eup %2987 }
 0x6d7   :  { %v2990_v16 = vpop.eup %2989  ;;  %1143 = vadd.xlane.f32.xlu0 %v2988_v8 }
 0x6d8   :  { %1235 = vadd.xlane.f32.xlu1 %v2990_v16 }
 0x754   :  { %v1230_v18 = vpop.xlane.xlu0 %1229 }
 0x755   :  { %2991 = vrcp.f32 %v1230_v18  ;;  %v1228_v19 = vpop.xlane.xlu1 %1227 }
 0x756   :  { %2993 = vrcp.f32 %v1228_v19 }
 0x758   :  { %v1138_v22 = vpop.xlane.xlu0 %1137 }
 0x759   :  { %2995 = vrcp.f32 %v1138_v22  ;;  %v1136_v23 = vpop.xlane.xlu1 %1135 }
 0x75a   :  { %2997 = vrcp.f32 %v1136_v23 }
 0x75c   :  { %v1234_v25 = vpop.xlane.xlu0 %1233 }
 0x75d   :  { %2999 = vrcp.f32 %v1234_v25  ;;  %v1232_v26 = vpop.xlane.xlu1 %1231 }
 0x75e   :  { %3001 = vrcp.f32 %v1232_v26 }
 0x75f   :  { %v2992_v27 = vpop.eup %2991 }
 0x760   :  { %v2994_v28 = vpop.eup %2993  ;;  %v1142_v29 = vpop.xlane.xlu0 %1141  ;;  %v1243_v30 = vmul.f32 %v2992_v27, %v2972_v55 }
 0x761   :  { %3003 = vrcp.f32 %v1142_v29  ;;  %v1140_v31 = vpop.xlane.xlu1 %1139  ;;  %v1242_v32 = vmul.f32 %v2994_v28, %v2974_v58 }
 0x762   :  { %3005 = vrcp.f32 %v1140_v31 }
 0x763   :  { %v2996_v33 = vpop.eup %2995  ;;  %v1247_v34 = vpack.c.bf16 %v1243_v30, %v1242_v32 }
 0x764   :  { %v2998_v35 = vpop.eup %2997  ;;  %v1144_v37 = vpop.xlane.xlu0 %1143  ;;  %v1151_v38 = vmul.f32 %v2996_v33, %v2976_v63 }
 0x765   :  { %3007 = vrcp.f32 %v1144_v37  ;;  %1302 = vmatprep.mubr.bf16.mxu1 %v1247_v34  ;;  %v1236_v39 = vpop.xlane.xlu1 %1235  ;;  %v1150_v40 = vmul.f32 %v2998_v35, %v2978_v2 }
 0x766   :  { %3009 = vrcp.f32 %v1236_v39 }
 0x767   :  { %v3000_v41 = vpop.eup %2999  ;;  %v1155_v42 = vpack.c.bf16 %v1151_v38, %v1150_v40 }
 0x768   :  { %v3002_v43 = vpop.eup %3001  ;;  %v1245_v44 = vmul.f32 %v3000_v41, %v2980_v3 }
 0x769   :  { %1303 = vmatmul.mubr.bf16.vlgmr.msra.gmra.mrb[4].mxu1 %v1155_v42  ;;  %v1244_v45 = vmul.f32 %v3002_v43, %v2982_v4 }
 0x76a   :  { %2767 = vmatpush3.bf16.msra.mxu1 %v2927_v17 }
 0x76b   :  { %v3004_v46 = vpop.eup %3003  ;;  %v1248_v47 = vpack.c.bf16 %v1245_v44, %v1244_v45  ;;  %2768 = vmatprep.subr.bf16.mxu1 %v2928_v60 }
 0x76c   :  { %v3006_v48 = vpop.eup %3005  ;;  %v1153_v49 = vmul.f32 %v3004_v46, %v2984_v5 }
 0x76d   :  { %1310 = vmatprep.mubr.bf16.mxu1 %v1248_v47  ;;  %v1152_v50 = vmul.f32 %v3006_v48, %v2986_v7 }
 0x76e   :  { %2769 = vmatpush3.bf16.msra.mxu1 %v2928_v60 }
 0x76f   :  { %v3008_v51 = vpop.eup %3007  ;;  %v1156_v52 = vpack.c.bf16 %v1153_v49, %v1152_v50  ;;  %2786 = vmatprep.subr.bf16.mxu1 %v3120_v12 }
 0x770   :  { %v3010_v55 = vpop.eup %3009  ;;  %v1154_v58 = vmul.f32 %v3008_v51, %v2988_v8 }
 0x771   :  { %1311 = vmatmul.mubr.bf16.gmra.mrb[8].mxu1 %v1156_v52  ;;  %v1246_v56 = vmul.f32 %v3010_v55, %v2990_v16 }
 0x772   :  { %v1157_v59 = vpack.c.bf16 %v1154_v58, %v1154_v58 }
 0x773   :  { %v1249_v57 = vpack.c.bf16 %v1246_v56, %v1246_v56 }
 0x775   :  { %1318 = vmatprep.mubr.bf16.mxu1 %v1249_v57 }
 0x779   :  { %1319 = vmatmul.mubr.bf16.gmra.mrb[12].mxu1 %v1157_v59 }
 0x83c   :  { %v2554_v61 = vpop.f32.mrb[4].mxu1 }
 0x83d   :  { %v2555_v62 = vpop.f32.mrb[5].mxu1 }
 0x83e   :  { %v2556_v63 = vadd.f32 %v2555_v62, %v2554_v61  ;;  %v2557_v0 = vpop.f32.mrb[6].mxu1 }
 0x83f   :  { %v2558_v2 = vpop.f32.mrb[7].mxu1 }
 0x840   :  { %v2559_v3 = vadd.f32 %v2558_v2, %v2557_v0  ;;  %v1305_v4 = vadd.f32 %v2556_v63, %v2433_v1 }
 0x842   :  { %v1308_v5 = vadd.f32 %v2559_v3, %v2433_v1 }
 0x844   :  { %v1332_v7 = vpack.c.bf16 %v1308_v5, %v1305_v4  ;;  %v2560_v8 = vpop.f32.mrb[8].mxu1 }
 0x845   :  { %v2561_v16 = vpop.f32.mrb[9].mxu1 }
 0x846   :  { %v2562_v17 = vadd.f32 %v2561_v16, %v2560_v8  ;;  %v2563_v18 = vpop.f32.mrb[10].mxu1  ;;  %2770 = vmatprep.mubr.msk.bf16.mxu1 %vm522_vm8, %v1332_v7 }
 0x847   :  { %v2564_v19 = vpop.f32.mrb[11].mxu1 }
 0x848   :  { %v2565_v22 = vadd.f32 %v2564_v19, %v2563_v18  ;;  %v1313_v23 = vadd.f32 %v2562_v17, %v2433_v1 }
 0x84a   :  { %v1316_v25 = vadd.f32 %v2565_v22, %v2433_v1 }
 0x84c   :  { %v1333_v26 = vpack.c.bf16 %v1316_v25, %v1313_v23  ;;  %v2566_v27 = vpop.f32.mrb[12].mxu1 }
 0x84d   :  { %v2567_v28 = vpop.f32.mrb[13].mxu1 }
 0x84e   :  { %v2568_v29 = vadd.f32 %v2567_v28, %v2566_v27  ;;  %v2569_v30 = vpop.f32.mrb[14].mxu1  ;;  %2771 = vmatmul.mubr.msk.bf16.vlgmr.msra.gmra.mrb[16].mxu1 %vm522_vm8, %v1333_v26 }
 0x84f   :  { %v2570_v31 = vpop.f32.mrb[15].mxu1 }
 0x850   :  { %v1321_v32 = vadd.f32 %v2568_v29, %v2433_v1 }
 0x852   :  { %v1334_v33 = vpack.c.bf16 %v3120_v12, %v1321_v32 }
 0x854   :  { %2774 = vmatprep.mubr.msk.bf16.mxu1 %vm522_vm8, %v1334_v33 }
 0x856   :  { %2775 = vmatmul.mubr.bf16.gmra.mrb[20].mxu1 %v3123_v24 }
 0x857   :  { %2778 = vmatprep.mubr.bf16.mxu1 %v3123_v24 }
 0x85e   :  { %2779 = vmatmul.mubr.bf16.gmra.mrb[24].mxu1 %v3123_v24 }
 0x85f   :  { %2782 = vmatprep.mubr.bf16.mxu1 %v3123_v24 }
 0x866   :  { %2783 = vmatmul.mubr.bf16.gmra.mrb[28].mxu1 %v3123_v24 }
 0x867   :  { %2802 = vmatprep.mubr.msk.bf16.mxu1 %vm3121_vm2, %v3120_v12 }
 0x921   :  { %v2772_v34 = vpop.f32.mrb[16].mxu1 }
 0x922   :  { %v1390_v35 = vpop.f32.mrb[17].mxu1 }
 0x923   :  { %1626 = vperm.xlu1 %2902, %v1390_v35   ;;  %v3329_v37 = vpop.f32.mrb[18].mxu1 }
 0x924   :  { %v1454_v38 = vpack.c.bf16 %v3329_v37, %v2772_v34  ;;  %v1393_v39 = vpop.f32.mrb[19].mxu1 }
 0x925   :  { %v1453_v40 = vpack.c.bf16 %v1393_v39, %v1390_v35  ;;  %1630 = vperm.xlu0 %2904, %v1393_v39  }
 0x926   :  { %v1726_v45 = vmul.bf16 %v1454_v38, %v3176_v20  ;;  %v1718_v50 = vmul.bf16 %v1454_v38, %v3178_v21  ;;  %v1468_v55 = vsel %vm522_vm8, %v1454_v38, 0 }
 0x927   :  { %2905 = vset.pattern.permute.xlu1 %v3119_v11  ;;  %v1465_v41 = vsel %vm522_vm8, %v1453_v40, 0  ;;  %v1725_v42 = vmul.bf16 %v1453_v40, %v3176_v20  ;;  %v1717_v43 = vmul.bf16 %v1453_v40, %v3178_v21 }
 0x928   :  { %1530 = vperm.xlu1 %2905, %v1390_v35   ;;  %2787 = vmatpush3.bf16.xpose.msra.mxu1 %v1465_v41 }
 0x929   :  { %v2776_v44 = vpop.f32.mrb[20].mxu1  ;;  %2591 = vmatprep.subr.bf16.mxu0 %v1725_v42  ;;  %2788 = vmatprep.subr.bf16.mxu1 %v3120_v12 }
 0x92a   :  { %v1406_v46 = vpop.f32.mrb[21].mxu1  ;;  %2592 = vmatpush3.bf16.msra.mxu0 %v1717_v43  ;;  %2909 = vset.pattern.permute.xlu0 %v3119_v11 }
 0x92b   :  { %v2777_v47 = vpop.f32.mrb[22].mxu1  ;;  %2593 = vmatprep.subr.bf16.mxu0 %v1726_v45  ;;  %1550 = vperm.xlu0 %2909, %v1406_v46  }
 0x92c   :  { %v1456_v48 = vpack.c.bf16 %v2777_v47, %v2776_v44  ;;  %2906 = vset.pattern.permute.xlu1 %v3118_v10  ;;  %v1409_v49 = vpop.f32.mrb[23].mxu1 }
 0x92d   :  { %v1455_v51 = vpack.c.bf16 %v1409_v49, %v1406_v46  ;;  %1634 = vperm.xlu1 %2906, %v2772_v34  }
 0x92e   :  { %2594 = vmatpush3.bf16.msra.mxu0 %v1718_v50  ;;  %v1728_v57 = vmul.bf16 %v1456_v48, %v3176_v20  ;;  %v1720_v59 = vmul.bf16 %v1456_v48, %v3178_v21  ;;  %v1474_v19 = vsel %vm522_vm8, %v1456_v48, 0 }
 0x92f   :  { %v1719_v52 = vmul.bf16 %v1455_v51, %v3178_v21  ;;  %v1727_v56 = vmul.bf16 %v1455_v51, %v3176_v20  ;;  %v1471_v1 = vsel %vm522_vm8, %v1455_v51, 0 }
 0x930   :  { %2789 = vmatpush3.bf16.xpose.msra.mxu1 %v1468_v55 }
 0x931   :  { %1638 = vperm.xlu1 %2906, %v3329_v37   ;;  %2595 = vmatprep.subr.bf16.mxu0 %v1727_v56  ;;  %v2780_v58 = vpop.f32.mrb[24].mxu1 }
 0x932   :  { %2596 = vmatpush3.bf16.msra.mxu0 %v1719_v52  ;;  %2790 = vmatprep.subr.bf16.mxu1 %v3120_v12  ;;  %v1422_v60 = vpop.f32.mrb[25].mxu1 }
 0x933   :  { %2597 = vmatprep.subr.bf16.mxu0 %v1728_v57  ;;  %v2781_v61 = vpop.f32.mrb[26].mxu1 }
 0x934   :  { %v1458_v62 = vpack.c.bf16 %v2781_v61, %v2780_v58  ;;  %v1425_v63 = vpop.f32.mrb[27].mxu1 }
 0x935   :  { %2907 = vset.pattern.permute.xlu1 %v3119_v11  ;;  %v1457_v0 = vpack.c.bf16 %v1425_v63, %v1422_v60 }
 0x936   :  { %1535 = vperm.xlu1 %2907, %v1393_v39   ;;  %2598 = vmatpush3.bf16.msra.mxu0 %v1720_v59  ;;  %v1730_v4 = vmul.bf16 %v1458_v62, %v3176_v20  ;;  %v1722_v7 = vmul.bf16 %v1458_v62, %v3178_v21  ;;  %v1480_v28 = vsel %vm522_vm8, %v1458_v62, 0 }
 0x937   :  { %v1721_v2 = vmul.bf16 %v1457_v0, %v3178_v21  ;;  %v1729_v3 = vmul.bf16 %v1457_v0, %v3176_v20  ;;  %v1477_v27 = vsel %vm522_vm8, %v1457_v0, 0 }
 0x938   :  { %2791 = vmatpush3.bf16.xpose.msra.mxu1 %v1471_v1 }
 0x939   :  { %2792 = vmatprep.subr.bf16.mxu1 %v3120_v12  ;;  %2599 = vmatprep.subr.bf16.mxu0 %v1729_v3  ;;  %v2784_v5 = vpop.f32.mrb[28].mxu1 }
 0x93a   :  { %1540 = vperm.xlu1 %2907, %v2772_v34   ;;  %2600 = vmatpush3.bf16.msra.mxu0 %v1721_v2  ;;  %v1438_v11 = vpop.f32.mrb[29].mxu1 }
 0x93b   :  { %2601 = vmatprep.subr.bf16.mxu0 %v1730_v4  ;;  %v2785_v8 = vpop.f32.mrb[30].mxu1 }
 0x93c   :  { %v1460_v16 = vpack.c.bf16 %v2785_v8, %v2784_v5  ;;  %v1441_v17 = vpop.f32.mrb[31].mxu1 }
 0x93d   :  { %v1459_v18 = vpack.c.bf16 %v1441_v17, %v1438_v11 }
 0x93e   :  { %1545 = vperm.xlu1 %2907, %v3329_v37   ;;  %2602 = vmatpush3.bf16.msra.mxu0 %v1722_v7  ;;  %v1732_v25 = vmul.bf16 %v1460_v16, %v3176_v20  ;;  %v1724_v26 = vmul.bf16 %v1460_v16, %v3178_v21 }
 0x93f   :  { %v1723_v22 = vmul.bf16 %v1459_v18, %v3178_v21  ;;  %v1731_v23 = vmul.bf16 %v1459_v18, %v3176_v20  ;;  %v1483_v20 = vsel %vm522_vm8, %v1459_v18, 0  ;;  %v1330_v21 = vld [vmem:[#allocation2 + $0xa0] sm:$0x1] }
 0x940   :  { %2793 = vmatpush3.bf16.xpose.msra.mxu1 %v1474_v19 }
 0x941   :  { %2794 = vmatprep.subr.bf16.mxu1 %v3120_v12  ;;  %2603 = vmatprep.subr.bf16.mxu0 %v1731_v23 }
 0x942   :  { %2908 = vset.pattern.permute.xlu1 %v3118_v10  ;;  %2604 = vmatpush3.bf16.msra.mxu0 %v1723_v22  ;;  %v1486_v10 = vsel %vm522_vm8, %v1460_v16, 0 }
 0x943   :  { %1642 = vperm.xlu1 %2908, %v1406_v46   ;;  %2605 = vmatprep.subr.bf16.mxu0 %v1732_v25 }
 0x946   :  { %2606 = vmatpush3.bf16.msra.mxu0 %v1724_v26 }
 0x948   :  { %2795 = vmatpush3.bf16.xpose.msra.mxu1 %v1477_v27 }
 0x949   :  { %2796 = vmatprep.subr.bf16.mxu1 %v3120_v12 }
 0x950   :  { %2797 = vmatpush3.bf16.xpose.msra.mxu1 %v1480_v28 }
 0x951   :  { %2798 = vmatprep.subr.bf16.mxu1 %v3120_v12 }
 0x958   :  { %2799 = vmatpush3.bf16.xpose.msra.mxu1 %v1483_v20 }
 0x959   :  { %2800 = vmatprep.subr.bf16.mxu1 %v3120_v12 }
 0x960   :  { %2801 = vmatpush3.bf16.xpose.msra.mxu1 %v1486_v10 }
 0x967   :  { %2803 = vmatmul.mubr.msk.bf16.vlgmr.msra.gmra.mrb[32].mxu1 %vm522_vm8, %v1330_v21 }
 0x9a2   :  { %v1627_v29 = vpop.permute.xlu1 %1626 }
 0x9a4   :  { %v1631_v40 = vpop.permute.xlu0 %1630 }
 0x9a7   :  { %v1531_v30 = vpop.permute.xlu1 %1530 }
 0x9aa   :  { %v1551_v2 = vpop.permute.xlu0 %1550 }
 0x9ac   :  { %v1635_v31 = vpop.permute.xlu1 %1634 }
 0x9b0   :  { %v1639_v32 = vpop.permute.xlu1 %1638 }
 0x9b5   :  { %v1536_v33 = vpop.permute.xlu1 %1535 }
 0x9b9   :  { %v1541_v34 = vpop.permute.xlu1 %1540 }
 0x9bd   :  { %v1546_v49 = vpop.permute.xlu1 %1545 }
 0x9c2   :  { %v1643_v3 = vpop.permute.xlu1 %1642 }
 0xa3a   :  { %v1522_v35 = vpop.f32.mrb[32].mxu1 }
 0xa3b   :  { %v1556_v37 = vrot.slane %v1522_v35, %v3218_v9  ;;  %v1648_v38 = vrot.slane %v1522_v35, %v3220_v15  ;;  %v2804_v39 = vpop.f32.mrb[33].mxu1 }
 0xa3c   :  { %v1525_v41 = vpop.f32.mrb[34].mxu1 }
 0xa3d   :  { %v2805_v42 = vpop.f32.mrb[35].mxu1  ;;  %v1650_v43 = vadd.f32 %v1648_v38, %v1631_v40  ;;  %v1649_v44 = vadd.f32 %v1648_v38, %v1627_v29  ;;  %v1558_v45 = vadd.f32 %v1556_v37, %v1536_v33  ;;  %v1557_v46 = vadd.f32 %v1556_v37, %v1531_v30 }
 0xa3e   :  { %v1652_v47 = vadd.f32 %v1648_v38, %v1639_v32  ;;  %v1651_v48 = vadd.f32 %v1648_v38, %v1635_v31  ;;  %v1560_v60 = vadd.f32 %v1556_v37, %v1546_v49  ;;  %v1559_v61 = vadd.f32 %v1556_v37, %v1541_v34 }
 0xa3f   :  { %v1655_v50 = vmul.f32 0.2, %v1650_v43  ;;  %v1654_v51 = vmul.f32 0.2, %v1649_v44  ;;  %v1563_v52 = vmul.f32 0.2, %v1558_v45  ;;  %v1561_v7 = vadd.f32 %v1556_v37, %v1551_v2 }
 0xa40   :  { %v1562_v55 = vmul.f32 0.2, %v1557_v46  ;;  %v1657_v58 = vmul.f32 0.2, %v1652_v47  ;;  %v1656_v59 = vmul.f32 0.2, %v1651_v48  ;;  %v1653_v11 = vadd.f32 %v1648_v38, %v1643_v3 }
 0xa41   :  { %v1660_v56 = vmax.f32 %v1650_v43, %v1655_v50  ;;  %v1659_v57 = vmax.f32 %v1649_v44, %v1654_v51  ;;  %v1568_v0 = vmax.f32 %v1558_v45, %v1563_v52  ;;  %v1565_v5 = vmul.f32 0.2, %v1560_v60 }
 0xa42   :  { %v1567_v1 = vmax.f32 %v1557_v46, %v1562_v55  ;;  %v1662_v4 = vmax.f32 %v1652_v47, %v1657_v58  ;;  %v1661_v17 = vmax.f32 %v1651_v48, %v1656_v59  ;;  %v1564_v18 = vmul.f32 0.2, %v1559_v61 }
 0xa43   :  { %v1665_v62 = vadd.f32 %v3224_v13, %v1660_v56  ;;  %v1664_v63 = vadd.f32 %v3226_v36, %v1659_v57  ;;  %v1573_v8 = vadd.f32 %v3224_v13, %v1568_v0  ;;  %v1570_v22 = vmax.f32 %v1560_v60, %v1565_v5 }
 0xa44   :  { %v1572_v16 = vadd.f32 %v3226_v36, %v1567_v1  ;;  %v1667_v19 = vadd.f32 %v3230_v53, %v1662_v4  ;;  %v1666_v23 = vadd.f32 %v3232_v54, %v1661_v17  ;;  %v1569_v25 = vmax.f32 %v1559_v61, %v1564_v18  ;;  %v2929_v17 = vld [vmem:[#allocation2 + $0x80] sm:$0xff]  }
 0xa45   :  { %1671 = vmax.xlane.f32.xlu0 %v1665_v62  ;;  %1669 = vmax.xlane.f32.xlu1 %v1664_v63  ;;  %v1566_v26 = vmul.f32 0.2, %v1561_v7  ;;  %v1658_v27 = vmul.f32 0.2, %v1653_v11  ;;  %v1575_v28 = vadd.f32 %v3230_v53, %v1570_v22 }
 0xa46   :  { %v1574_v20 = vadd.f32 %v3232_v54, %v1569_v25  ;;  %2806 = vmatprep.subr.bf16.mxu0 %v2929_v17 }
 0xa47   :  { %v1571_v10 = vmax.f32 %v1561_v7, %v1566_v26  ;;  %v1663_v21 = vmax.f32 %v1653_v11, %v1658_v27 }
 0xa49   :  { %1579 = vmax.xlane.f32.xlu0 %v1573_v8  ;;  %1577 = vmax.xlane.f32.xlu1 %v1572_v16  ;;  %v1576_v29 = vadd.f32 %v1571_v10, %v3238_v6  ;;  %v1668_v30 = vadd.f32 %v1663_v21, %v3238_v6 }
 0xa4d   :  { %1675 = vmax.xlane.f32.xlu0 %v1667_v19  ;;  %1673 = vmax.xlane.f32.xlu1 %v1666_v23 }
 0xa51   :  { %1583 = vmax.xlane.f32.xlu0 %v1575_v28  ;;  %1581 = vmax.xlane.f32.xlu1 %v1574_v20 }
 0xa55   :  { %1585 = vmax.xlane.f32.xlu0 %v1576_v29  ;;  %1677 = vmax.xlane.f32.xlu1 %v1668_v30 }
 0xad2   :  { %v1672_v31 = vpop.xlane.xlu0 %1671  ;;  %v1670_v32 = vpop.xlane.xlu1 %1669 }
 0xad3   :  { %v1680_v33 = vsub.f32 %v1665_v62, %v1672_v31  ;;  %v1679_v34 = vsub.f32 %v1664_v63, %v1670_v32 }
 0xad5   :  { %v1686_v35 = vmul.f32 1.442695, %v1680_v33  ;;  %v1684_v37 = vmul.f32 1.442695, %v1679_v34 }
 0xad6   :  { %v1580_v38 = vpop.xlane.xlu0 %1579  ;;  %v1578_v39 = vpop.xlane.xlu1 %1577 }
 0xad7   :  { %3011 = vpow2.f32 %v1686_v35  ;;  %v1588_v40 = vsub.f32 %v1573_v8, %v1580_v38  ;;  %v1587_v41 = vsub.f32 %v1572_v16, %v1578_v39 }
 0xad8   :  { %3013 = vpow2.f32 %v1684_v37 }
 0xad9   :  { %v1594_v42 = vmul.f32 1.442695, %v1588_v40  ;;  %v1592_v43 = vmul.f32 1.442695, %v1587_v41 }
 0xada   :  { %v1676_v44 = vpop.xlane.xlu0 %1675  ;;  %v1674_v45 = vpop.xlane.xlu1 %1673 }
 0xadb   :  { %3015 = vpow2.f32 %v1594_v42  ;;  %v1682_v46 = vsub.f32 %v1667_v19, %v1676_v44  ;;  %v1681_v47 = vsub.f32 %v1666_v23, %v1674_v45 }
 0xadc   :  { %3017 = vpow2.f32 %v1592_v43 }
 0xadd   :  { %v1690_v48 = vmul.f32 1.442695, %v1682_v46  ;;  %v1688_v49 = vmul.f32 1.442695, %v1681_v47 }
 0xade   :  { %v1584_v50 = vpop.xlane.xlu0 %1583  ;;  %v1582_v51 = vpop.xlane.xlu1 %1581 }
 0xadf   :  { %3019 = vpow2.f32 %v1690_v48  ;;  %v1590_v52 = vsub.f32 %v1575_v28, %v1584_v50  ;;  %v1589_v55 = vsub.f32 %v1574_v20, %v1582_v51 }
 0xae0   :  { %3021 = vpow2.f32 %v1688_v49 }
 0xae1   :  { %v3012_v56 = vpop.eup %3011  ;;  %v1598_v57 = vmul.f32 1.442695, %v1590_v52  ;;  %v1596_v58 = vmul.f32 1.442695, %v1589_v55 }
 0xae2   :  { %v3014_v59 = vpop.eup %3013  ;;  %1696 = vadd.xlane.f32.xlu0 %v3012_v56  ;;  %v1586_v60 = vpop.xlane.xlu0 %1585 }
 0xae3   :  { %v1678_v61 = vpop.xlane.xlu1 %1677  ;;  %3023 = vpow2.f32 %v1598_v57  ;;  %v1591_v62 = vsub.f32 %v1576_v29, %v1586_v60  ;;  %1694 = vadd.xlane.f32.xlu1 %v3014_v59  ;;  %v2930_v57 = vld [vmem:[#allocation2 + $0x88] sm:$0xff]  }
 0xae4   :  { %v1683_v63 = vsub.f32 %v1668_v30, %v1678_v61  ;;  %3025 = vpow2.f32 %v1596_v58 }
 0xae5   :  { %v3016_v0 = vpop.eup %3015  ;;  %v1600_v1 = vmul.f32 1.442695, %v1591_v62  ;;  %v2440_v62 = vld [vmem:[%s3509_s1 + $0x2] ss:$0 sm:$0xff] }
 0xae6   :  { %v1692_v2 = vmul.f32 1.442695, %v1683_v63  ;;  %v3018_v3 = vpop.eup %3017  ;;  %1604 = vadd.xlane.f32.xlu0 %v3016_v0 }
 0xae7   :  { %3027 = vpow2.f32 %v1600_v1  ;;  %1602 = vadd.xlane.f32.xlu1 %v3018_v3 }
 0xae8   :  { %3029 = vpow2.f32 %v1692_v2 }
 0xae9   :  { %v3020_v4 = vpop.eup %3019 }
 0xaea   :  { %v3022_v5 = vpop.eup %3021  ;;  %1700 = vadd.xlane.f32.xlu0 %v3020_v4 }
 0xaeb   :  { %1698 = vadd.xlane.f32.xlu1 %v3022_v5 }
 0xaed   :  { %v3024_v7 = vpop.eup %3023 }
 0xaee   :  { %v3026_v11 = vpop.eup %3025  ;;  %1608 = vadd.xlane.f32.xlu0 %v3024_v7 }
 0xaef   :  { %1606 = vadd.xlane.f32.xlu1 %v3026_v11 }
 0xaf1   :  { %v3028_v8 = vpop.eup %3027 }
 0xaf2   :  { %v3030_v16 = vpop.eup %3029  ;;  %1610 = vadd.xlane.f32.xlu0 %v3028_v8 }
 0xaf3   :  { %1702 = vadd.xlane.f32.xlu1 %v3030_v16 }
 0xb6f   :  { %v1697_v18 = vpop.xlane.xlu0 %1696 }
 0xb70   :  { %3031 = vrcp.f32 %v1697_v18  ;;  %v1695_v19 = vpop.xlane.xlu1 %1694 }
 0xb71   :  { %3033 = vrcp.f32 %v1695_v19 }
 0xb73   :  { %v1605_v22 = vpop.xlane.xlu0 %1604 }
 0xb74   :  { %3035 = vrcp.f32 %v1605_v22  ;;  %v1603_v23 = vpop.xlane.xlu1 %1602 }
 0xb75   :  { %3037 = vrcp.f32 %v1603_v23 }
 0xb77   :  { %v1701_v25 = vpop.xlane.xlu0 %1700 }
 0xb78   :  { %3039 = vrcp.f32 %v1701_v25  ;;  %v1699_v26 = vpop.xlane.xlu1 %1698 }
 0xb79   :  { %3041 = vrcp.f32 %v1699_v26 }
 0xb7a   :  { %v3032_v27 = vpop.eup %3031 }
 0xb7b   :  { %v3034_v28 = vpop.eup %3033  ;;  %v1609_v20 = vpop.xlane.xlu0 %1608  ;;  %v1710_v10 = vmul.f32 %v3032_v27, %v3012_v56 }
 0xb7c   :  { %3043 = vrcp.f32 %v1609_v20  ;;  %v1607_v21 = vpop.xlane.xlu1 %1606  ;;  %v1709_v29 = vmul.f32 %v3034_v28, %v3014_v59 }
 0xb7d   :  { %3045 = vrcp.f32 %v1607_v21  ;;  %v297_v21 = vsel %vm265_vm12, 1.0, %v3120_v12 }
 0xb7e   :  { %v3036_v30 = vpop.eup %3035  ;;  %v1714_v31 = vpack.c.bf16 %v1710_v10, %v1709_v29  ;;  %v3124_v10 = vmov 17   ;;  %v281_v29 = vsel %vm249_vm11, 1.0, %v3120_v12 }
 0xb7f   :  { %v3038_v32 = vpop.eup %3037  ;;  %v1611_v33 = vpop.xlane.xlu0 %1610  ;;  %v1618_v34 = vmul.f32 %v3036_v30, %v3016_v0  ;;  %2910 = vset.pattern.permute.xlu1 %v3124_v10  ;;  %2911 = vset.pattern.permute.xlu0 %v3124_v10 }
 0xb80   :  { %3047 = vrcp.f32 %v1611_v33  ;;  %1769 = vmatprep.mubr.bf16.mxu0 %v1714_v31  ;;  %v1703_v35 = vpop.xlane.xlu1 %1702  ;;  %v1617_v37 = vmul.f32 %v3038_v32, %v3018_v3  ;;  %v3408_v33 = vpack.c.bf16 %v297_v21, %v297_v21 }
 0xb81   :  { %3049 = vrcp.f32 %v1703_v35 }
 0xb82   :  { %v3040_v38 = vpop.eup %3039  ;;  %v1622_v39 = vpack.c.bf16 %v1618_v34, %v1617_v37  ;;  %v3410_v34 = vpack.c.bf16 %v281_v29, %v281_v29 }
 0xb83   :  { %v3042_v40 = vpop.eup %3041  ;;  %v1712_v41 = vmul.f32 %v3040_v38, %v3020_v4  ;;  %v3125_v38 = vmov 16  }
 0xb84   :  { %1770 = vmatmul.mubr.bf16.vlgmr.msra.gmra.mrb[48].mxu0 %v1622_v39  ;;  %v1711_v42 = vmul.f32 %v3042_v40, %v3022_v5 }
 0xb85   :  { %2807 = vmatpush3.bf16.msra.mxu0 %v2929_v17 }
 0xb86   :  { %v3044_v43 = vpop.eup %3043  ;;  %v1715_v44 = vpack.c.bf16 %v1712_v41, %v1711_v42  ;;  %2808 = vmatprep.subr.bf16.mxu0 %v2930_v57 }
 0xb87   :  { %v3046_v45 = vpop.eup %3045  ;;  %v1620_v46 = vmul.f32 %v3044_v43, %v3024_v7 }
 0xb88   :  { %1777 = vmatprep.mubr.bf16.mxu0 %v1715_v44  ;;  %v1619_v47 = vmul.f32 %v3046_v45, %v3026_v11 }
 0xb89   :  { %2809 = vmatpush3.bf16.msra.mxu0 %v2930_v57 }
 0xb8a   :  { %v3048_v48 = vpop.eup %3047  ;;  %v1623_v49 = vpack.c.bf16 %v1620_v46, %v1619_v47  ;;  %2826 = vmatprep.subr.bf16.mxu0 %v3120_v12 }
 0xb8b   :  { %v3050_v50 = vpop.eup %3049  ;;  %v1621_v55 = vmul.f32 %v3048_v48, %v3028_v8 }
 0xb8c   :  { %1778 = vmatmul.mubr.bf16.gmra.mrb[52].mxu0 %v1623_v49  ;;  %v1713_v51 = vmul.f32 %v3050_v50, %v3030_v16 }
 0xb8d   :  { %v1624_v56 = vpack.c.bf16 %v1621_v55, %v1621_v55 }
 0xb8e   :  { %v1716_v52 = vpack.c.bf16 %v1713_v51, %v1713_v51 }
 0xb90   :  { %1785 = vmatprep.mubr.bf16.mxu0 %v1716_v52 }
 0xb94   :  { %1786 = vmatmul.mubr.bf16.gmra.mrb[56].mxu0 %v1624_v56 }
 0xc57   :  { %v2607_v58 = vpop.f32.mrb[48].mxu0 }
 0xc58   :  { %v2608_v59 = vpop.f32.mrb[49].mxu0 }
 0xc59   :  { %v2609_v60 = vadd.f32 %v2608_v59, %v2607_v58  ;;  %v2610_v61 = vpop.f32.mrb[50].mxu0 }
 0xc5a   :  { %v2611_v63 = vpop.f32.mrb[51].mxu0 }
 0xc5b   :  { %v2612_v0 = vadd.f32 %v2611_v63, %v2610_v61  ;;  %v1772_v1 = vadd.f32 %v2609_v60, %v2440_v62 }
 0xc5d   :  { %v1775_v2 = vadd.f32 %v2612_v0, %v2440_v62 }
 0xc5f   :  { %v1799_v3 = vpack.c.bf16 %v1775_v2, %v1772_v1  ;;  %v2613_v4 = vpop.f32.mrb[52].mxu0 }
 0xc60   :  { %v2614_v5 = vpop.f32.mrb[53].mxu0 }
 0xc61   :  { %v2615_v7 = vadd.f32 %v2614_v5, %v2613_v4  ;;  %v2616_v11 = vpop.f32.mrb[54].mxu0  ;;  %2810 = vmatprep.mubr.msk.bf16.mxu0 %vm522_vm8, %v1799_v3 }
 0xc62   :  { %v2617_v8 = vpop.f32.mrb[55].mxu0 }
 0xc63   :  { %v2618_v16 = vadd.f32 %v2617_v8, %v2616_v11  ;;  %v1780_v17 = vadd.f32 %v2615_v7, %v2440_v62 }
 0xc65   :  { %v1783_v18 = vadd.f32 %v2618_v16, %v2440_v62 }
 0xc67   :  { %v1800_v19 = vpack.c.bf16 %v1783_v18, %v1780_v17  ;;  %v2619_v22 = vpop.f32.mrb[56].mxu0 }
 0xc68   :  { %v2620_v23 = vpop.f32.mrb[57].mxu0 }
 0xc69   :  { %v2621_v25 = vadd.f32 %v2620_v23, %v2619_v22  ;;  %v2622_v26 = vpop.f32.mrb[58].mxu0  ;;  %2811 = vmatmul.mubr.msk.bf16.vlgmr.msra.gmra.mrb[60].mxu0 %vm522_vm8, %v1800_v19 }
 0xc6a   :  { %v2623_v27 = vpop.f32.mrb[59].mxu0 }
 0xc6b   :  { %v1788_v28 = vadd.f32 %v2621_v25, %v2440_v62 }
 0xc6d   :  { %v1801_v20 = vpack.c.bf16 %v3120_v12, %v1788_v28 }
 0xc6f   :  { %2814 = vmatprep.mubr.msk.bf16.mxu0 %vm522_vm8, %v1801_v20  ;;  %v1797_v20 = vld [vmem:[#allocation2 + $0xa8] sm:$0x1] }
 0xc71   :  { %2815 = vmatmul.mubr.bf16.gmra.mrb[64].mxu0 %v3123_v24 }
 0xc72   :  { %2818 = vmatprep.mubr.bf16.mxu0 %v3123_v24 }
 0xc79   :  { %2819 = vmatmul.mubr.bf16.gmra.mrb[68].mxu0 %v3123_v24 }
 0xc7a   :  { %2822 = vmatprep.mubr.bf16.mxu0 %v3123_v24 }
 0xc81   :  { %2823 = vmatmul.mubr.bf16.gmra.mrb[72].mxu0 %v3123_v24 }
 0xc82   :  { %2842 = vmatprep.mubr.msk.bf16.mxu0 %vm3121_vm2, %v3120_v12 }
 0xd3c   :  { %v2812_v30 = vpop.f32.mrb[60].mxu0 }
 0xd3d   :  { %v1857_v31 = vpop.f32.mrb[61].mxu0 }
 0xd3e   :  { %2094 = vperm.xlu1 %2910, %v1857_v31   ;;  %v3406_v32 = vpop.f32.mrb[62].mxu0 }
 0xd3f   :  { %v1921_v14 = vpack.c.bf16 %v3406_v32, %v2812_v30  ;;  %v1860_v35 = vpop.f32.mrb[63].mxu0 }
 0xd40   :  { %v1920_v37 = vpack.c.bf16 %v1860_v35, %v1857_v31  ;;  %2098 = vperm.xlu0 %2911, %v1860_v35  }
 0xd41   :  { %v2194_v43 = vmul.bf16 %v1921_v14, %v3408_v33  ;;  %v2186_v48 = vmul.bf16 %v1921_v14, %v3410_v34  ;;  %v1936_v51 = vsel %vm1928_vm13, %v1921_v14, 0 }
 0xd42   :  { %2912 = vset.pattern.permute.xlu1 %v3125_v38  ;;  %v1933_v39 = vsel %vm1928_vm13, %v1920_v37, 0  ;;  %v2193_v40 = vmul.bf16 %v1920_v37, %v3408_v33  ;;  %v2185_v41 = vmul.bf16 %v1920_v37, %v3410_v34 }
 0xd43   :  { %1998 = vperm.xlu1 %2912, %v1857_v31   ;;  %2827 = vmatpush3.bf16.xpose.msra.mxu0 %v1933_v39 }
 0xd44   :  { %v2816_v42 = vpop.f32.mrb[64].mxu0  ;;  %2644 = vmatprep.subr.bf16.mxu1 %v2193_v40  ;;  %2828 = vmatprep.subr.bf16.mxu0 %v3120_v12 }
 0xd45   :  { %v3419_v44 = vpop.f32.mrb[65].mxu0  ;;  %2645 = vmatpush3.bf16.msra.mxu1 %v2185_v41 }
 0xd46   :  { %v2817_v45 = vpop.f32.mrb[66].mxu0  ;;  %2646 = vmatprep.subr.bf16.mxu1 %v2194_v43 }
 0xd47   :  { %v1923_v46 = vpack.c.bf16 %v2817_v45, %v2816_v42  ;;  %2913 = vset.pattern.permute.xlu1 %v3124_v10  ;;  %v1876_v47 = vpop.f32.mrb[67].mxu0 }
 0xd48   :  { %v1922_v49 = vpack.c.bf16 %v1876_v47, %v3419_v44  ;;  %2102 = vperm.xlu1 %2913, %v2812_v30  }
 0xd49   :  { %2647 = vmatpush3.bf16.msra.mxu1 %v2186_v48  ;;  %v2196_v55 = vmul.bf16 %v1923_v46, %v3408_v33  ;;  %v2188_v57 = vmul.bf16 %v1923_v46, %v3410_v34  ;;  %v1942_v17 = vsel %vm1928_vm13, %v1923_v46, 0 }
 0xd4a   :  { %v2187_v50 = vmul.bf16 %v1922_v49, %v3410_v34  ;;  %v2195_v52 = vmul.bf16 %v1922_v49, %v3408_v33  ;;  %v1939_v63 = vsel %vm1928_vm13, %v1922_v49, 0 }
 0xd4b   :  { %2829 = vmatpush3.bf16.xpose.msra.mxu0 %v1936_v51 }
 0xd4c   :  { %2106 = vperm.xlu1 %2913, %v3406_v32   ;;  %2648 = vmatprep.subr.bf16.mxu1 %v2195_v52  ;;  %v2820_v56 = vpop.f32.mrb[68].mxu0 }
 0xd4d   :  { %2649 = vmatpush3.bf16.msra.mxu1 %v2187_v50  ;;  %2830 = vmatprep.subr.bf16.mxu0 %v3120_v12  ;;  %v1889_v58 = vpop.f32.mrb[69].mxu0 }
 0xd4e   :  { %2650 = vmatprep.subr.bf16.mxu1 %v2196_v55  ;;  %v2821_v59 = vpop.f32.mrb[70].mxu0 }
 0xd4f   :  { %v1925_v60 = vpack.c.bf16 %v2821_v59, %v2820_v56  ;;  %v1892_v61 = vpop.f32.mrb[71].mxu0 }
 0xd50   :  { %2914 = vset.pattern.permute.xlu1 %v3125_v38  ;;  %v1924_v62 = vpack.c.bf16 %v1892_v61, %v1889_v58 }
 0xd51   :  { %2003 = vperm.xlu1 %2914, %v1860_v35   ;;  %2651 = vmatpush3.bf16.msra.mxu1 %v2188_v57  ;;  %v2198_v2 = vmul.bf16 %v1925_v60, %v3408_v33  ;;  %v2190_v4 = vmul.bf16 %v1925_v60, %v3410_v34  ;;  %v1948_v26 = vsel %vm1928_vm13, %v1925_v60, 0 }
 0xd52   :  { %v2189_v0 = vmul.bf16 %v1924_v62, %v3410_v34  ;;  %v2197_v1 = vmul.bf16 %v1924_v62, %v3408_v33  ;;  %v1945_v25 = vsel %vm1928_vm13, %v1924_v62, 0 }
 0xd53   :  { %2831 = vmatpush3.bf16.xpose.msra.mxu0 %v1939_v63 }
 0xd54   :  { %2832 = vmatprep.subr.bf16.mxu0 %v3120_v12  ;;  %2652 = vmatprep.subr.bf16.mxu1 %v2197_v1  ;;  %v2824_v3 = vpop.f32.mrb[72].mxu0 }
 0xd55   :  { %2008 = vperm.xlu1 %2914, %v2812_v30   ;;  %2653 = vmatpush3.bf16.msra.mxu1 %v2189_v0  ;;  %v1905_v5 = vpop.f32.mrb[73].mxu0 }
 0xd56   :  { %2654 = vmatprep.subr.bf16.mxu1 %v2198_v2  ;;  %v2825_v7 = vpop.f32.mrb[74].mxu0 }
 0xd57   :  { %v1927_v11 = vpack.c.bf16 %v2825_v7, %v2824_v3  ;;  %v1908_v8 = vpop.f32.mrb[75].mxu0 }
 0xd58   :  { %v1926_v16 = vpack.c.bf16 %v1908_v8, %v1905_v5 }
 0xd59   :  { %2013 = vperm.xlu1 %2914, %v3406_v32   ;;  %2655 = vmatpush3.bf16.msra.mxu1 %v2190_v4  ;;  %v2200_v22 = vmul.bf16 %v1927_v11, %v3408_v33  ;;  %v2192_v23 = vmul.bf16 %v1927_v11, %v3410_v34  ;;  %v1954_v28 = vsel %vm1928_vm13, %v1927_v11, 0 }
 0xd5a   :  { %v2191_v18 = vmul.bf16 %v1926_v16, %v3410_v34  ;;  %v2199_v19 = vmul.bf16 %v1926_v16, %v3408_v33  ;;  %v1951_v27 = vsel %vm1928_vm13, %v1926_v16, 0 }
 0xd5b   :  { %2833 = vmatpush3.bf16.xpose.msra.mxu0 %v1942_v17 }
 0xd5c   :  { %2834 = vmatprep.subr.bf16.mxu0 %v3120_v12  ;;  %2656 = vmatprep.subr.bf16.mxu1 %v2199_v19 }
 0xd5d   :  { %2915 = vset.pattern.permute.xlu1 %v3124_v10  ;;  %2657 = vmatpush3.bf16.msra.mxu1 %v2191_v18 }
 0xd5e   :  { %2110 = vperm.xlu1 %2915, %v3419_v44   ;;  %2658 = vmatprep.subr.bf16.mxu1 %v2200_v22 }
 0xd61   :  { %2659 = vmatpush3.bf16.msra.mxu1 %v2192_v23 }
 0xd62   :  { %2916 = vset.pattern.permute.xlu1 %v3125_v38  ;;  %2871 = vmatprep.subr.bf16.mxu1 %v3123_v24 }
 0xd63   :  { %2018 = vperm.xlu1 %2916, %v3419_v44   ;;  %2835 = vmatpush3.bf16.xpose.msra.mxu0 %v1945_v25 }
 0xd64   :  { %2836 = vmatprep.subr.bf16.mxu0 %v3120_v12 }
 0xd6b   :  { %2837 = vmatpush3.bf16.xpose.msra.mxu0 %v1948_v26 }
 0xd6c   :  { %2838 = vmatprep.subr.bf16.mxu0 %v3120_v12 }
 0xd73   :  { %2839 = vmatpush3.bf16.xpose.msra.mxu0 %v1951_v27 }
 0xd74   :  { %2840 = vmatprep.subr.bf16.mxu0 %v3120_v12 }
 0xd7b   :  { %2841 = vmatpush3.bf16.xpose.msra.mxu0 %v1954_v28 }
 0xd82   :  { %2843 = vmatmul.mubr.msk.bf16.vlgmr.msra.gmra.mrb[76].mxu0 %vm1928_vm13, %v1797_v20 }
 0xdbd   :  { %v2095_v10 = vpop.permute.xlu1 %2094 }
 0xdbf   :  { %v2099_v38 = vpop.permute.xlu0 %2098 }
 0xdc2   :  { %v1999_v21 = vpop.permute.xlu1 %1998 }
 0xdc7   :  { %v2103_v29 = vpop.permute.xlu1 %2102 }
 0xdcb   :  { %v2107_v30 = vpop.permute.xlu1 %2106 }
 0xdd0   :  { %v2004_v31 = vpop.permute.xlu1 %2003 }
 0xdd4   :  { %v2009_v32 = vpop.permute.xlu1 %2008 }
 0xdd8   :  { %v2014_v34 = vpop.permute.xlu1 %2013 }
 0xddd   :  { %v2111_v51 = vpop.permute.xlu1 %2110 }
 0xde2   :  { %v2019_v5 = vpop.permute.xlu1 %2018 }
 0xe55   :  { %v1990_v33 = vpop.f32.mrb[76].mxu0 }
 0xe56   :  { %v2024_v14 = vrot.slane %v1990_v33, %v3218_v9  ;;  %v2116_v35 = vrot.slane %v1990_v33, %v3220_v15  ;;  %v2844_v37 = vpop.f32.mrb[77].mxu0 }
 0xe57   :  { %v1993_v39 = vpop.f32.mrb[78].mxu0 }
 0xe58   :  { %v2845_v40 = vpop.f32.mrb[79].mxu0  ;;  %v2118_v41 = vadd.f32 %v2116_v35, %v2099_v38  ;;  %v2117_v42 = vadd.f32 %v2116_v35, %v2095_v10  ;;  %v2119_v43 = vadd.f32 %v2116_v35, %v2103_v29  ;;  %v2025_v44 = vadd.f32 %v2024_v14, %v1999_v21 }
 0xe59   :  { %v2027_v45 = vadd.f32 %v2024_v14, %v2009_v32  ;;  %v2026_v46 = vadd.f32 %v2024_v14, %v2004_v31  ;;  %v2121_v15 = vadd.f32 %v2116_v35, %v2111_v51  ;;  %v2120_v57 = vadd.f32 %v2116_v35, %v2107_v30 }
 0xe5a   :  { %v2123_v47 = vmul.f32 0.2, %v2118_v41  ;;  %v2122_v48 = vmul.f32 0.2, %v2117_v42  ;;  %v2124_v49 = vmul.f32 0.2, %v2119_v43  ;;  %v2028_v0 = vadd.f32 %v2024_v14, %v2014_v34 }
 0xe5b   :  { %v2030_v50 = vmul.f32 0.2, %v2025_v44  ;;  %v2032_v9 = vmul.f32 0.2, %v2027_v45  ;;  %v2031_v56 = vmul.f32 0.2, %v2026_v46  ;;  %v2029_v11 = vadd.f32 %v2024_v14, %v2019_v5 }
 0xe5c   :  { %v2128_v52 = vmax.f32 %v2118_v41, %v2123_v47  ;;  %v2127_v55 = vmax.f32 %v2117_v42, %v2122_v48  ;;  %v2129_v60 = vmax.f32 %v2119_v43, %v2124_v49  ;;  %v2126_v63 = vmul.f32 0.2, %v2121_v15 }
 0xe5d   :  { %v2035_v61 = vmax.f32 %v2025_v44, %v2030_v50  ;;  %v2037_v62 = vmax.f32 %v2027_v45, %v2032_v9  ;;  %v2036_v3 = vmax.f32 %v2026_v46, %v2031_v56  ;;  %v2125_v4 = vmul.f32 0.2, %v2120_v57 }
 0xe5e   :  { %v2133_v58 = vadd.f32 %v3224_v13, %v2128_v52  ;;  %v2132_v59 = vadd.f32 %v3226_v36, %v2127_v55  ;;  %v2134_v1 = vadd.f32 %v3232_v54, %v2129_v60  ;;  %v2131_v7 = vmax.f32 %v2121_v15, %v2126_v63 }
 0xe5f   :  { %v2040_v2 = vadd.f32 %v3226_v36, %v2035_v61  ;;  %v2042_v8 = vadd.f32 %v3232_v54, %v2037_v62  ;;  %v2041_v16 = vadd.f32 %v3224_v13, %v2036_v3  ;;  %v2130_v17 = vmax.f32 %v2120_v57, %v2125_v4 }
 0xe60   :  { %2139 = vmax.xlane.f32.xlu1 %v2133_v58  ;;  %2137 = vmax.xlane.f32.xlu0 %v2132_v59  ;;  %v2033_v18 = vmul.f32 0.2, %v2028_v0  ;;  %v2136_v19 = vadd.f32 %v2131_v7, %v3238_v6  ;;  %v2034_v23 = vmul.f32 0.2, %v2029_v11 }
 0xe61   :  { %v2135_v22 = vadd.f32 %v3230_v53, %v2130_v17 }
 0xe62   :  { %v2038_v36 = vmax.f32 %v2028_v0, %v2033_v18  ;;  %v2039_v26 = vmax.f32 %v2029_v11, %v2034_v23 }
 0xe64   :  { %2141 = vmax.xlane.f32.xlu1 %v2134_v1  ;;  %2045 = vmax.xlane.f32.xlu0 %v2040_v2  ;;  %v2043_v25 = vadd.f32 %v3230_v53, %v2038_v36  ;;  %v2044_v54 = vadd.f32 %v2039_v26, %v3238_v6 }
 0xe68   :  { %2049 = vmax.xlane.f32.xlu1 %v2042_v8  ;;  %2047 = vmax.xlane.f32.xlu0 %v2041_v16 }
 0xe6c   :  { %2145 = vmax.xlane.f32.xlu1 %v2136_v19  ;;  %2143 = vmax.xlane.f32.xlu0 %v2135_v22 }
 0xe70   :  { %2051 = vmax.xlane.f32.xlu0 %v2043_v25 }
 0xe74   :  { %2053 = vmax.xlane.f32.xlu0 %v2044_v54 }
 0xeed   :  { %v2140_v13 = vpop.xlane.xlu1 %2139  ;;  %v2138_v27 = vpop.xlane.xlu0 %2137 }
 0xeee   :  { %v2148_v28 = vsub.f32 %v2133_v58, %v2140_v13  ;;  %v2147_v20 = vsub.f32 %v2132_v59, %v2138_v27 }
 0xef0   :  { %v2154_v10 = vmul.f32 1.442695, %v2148_v28  ;;  %v2152_v21 = vmul.f32 1.442695, %v2147_v20 }
 0xef1   :  { %v2142_v29 = vpop.xlane.xlu1 %2141  ;;  %v2046_v30 = vpop.xlane.xlu0 %2045 }
 0xef2   :  { %3051 = vpow2.f32 %v2154_v10  ;;  %v2149_v31 = vsub.f32 %v2134_v1, %v2142_v29  ;;  %v2055_v32 = vsub.f32 %v2040_v2, %v2046_v30 }
 0xef3   :  { %3053 = vpow2.f32 %v2152_v21 }
 0xef4   :  { %v2060_v33 = vmul.f32 1.442695, %v2055_v32  ;;  %v2156_v14 = vmul.f32 1.442695, %v2149_v31 }
 0xef5   :  { %v2050_v34 = vpop.xlane.xlu1 %2049  ;;  %v2048_v53 = vpop.xlane.xlu0 %2047 }
 0xef6   :  { %v2057_v35 = vsub.f32 %v2042_v8, %v2050_v34  ;;  %v2056_v37 = vsub.f32 %v2041_v16, %v2048_v53  ;;  %3055 = vpow2.f32 %v2060_v33 }
 0xef7   :  { %3057 = vpow2.f32 %v2156_v14 }
 0xef8   :  { %v2062_v6 = vmul.f32 1.442695, %v2056_v37  ;;  %v2064_v40 = vmul.f32 1.442695, %v2057_v35  ;;  %v2447_v37 = vld [vmem:[%s3509_s1 + $0x3] ss:$0 sm:$0xff] }
 0xef9   :  { %v2146_v38 = vpop.xlane.xlu1 %2145  ;;  %v2144_v39 = vpop.xlane.xlu0 %2143 }
 0xefa   :  { %v2150_v41 = vsub.f32 %v2135_v22, %v2144_v39  ;;  %3059 = vpow2.f32 %v2062_v6  ;;  %v2151_v42 = vsub.f32 %v2136_v19, %v2146_v38 }
 0xefb   :  { %3061 = vpow2.f32 %v2064_v40 }
 0xefc   :  { %v3052_v43 = vpop.eup %3051  ;;  %v2158_v44 = vmul.f32 1.442695, %v2150_v41  ;;  %v2160_v48 = vmul.f32 1.442695, %v2151_v42 }
 0xefd   :  { %v3054_v45 = vpop.eup %3053  ;;  %2164 = vadd.xlane.f32.xlu0 %v3052_v43  ;;  %v2052_v46 = vpop.xlane.xlu0 %2051 }
 0xefe   :  { %2162 = vadd.xlane.f32.xlu1 %v3054_v45  ;;  %v2058_v47 = vsub.f32 %v2043_v25, %v2052_v46  ;;  %3063 = vpow2.f32 %v2158_v44 }
 0xf00   :  { %v2066_v49 = vmul.f32 1.442695, %v2058_v47  ;;  %v3056_v50 = vpop.eup %3055 }
 0xf01   :  { %v2054_v51 = vpop.xlane.xlu0 %2053  ;;  %v3058_v55 = vpop.eup %3057 }
 0xf02   :  { %3065 = vpow2.f32 %v2066_v49  ;;  %2070 = vadd.xlane.f32.xlu1 %v3056_v50  ;;  %v2059_v52 = vsub.f32 %v2044_v54, %v2054_v51 }
 0xf03   :  { %3067 = vpow2.f32 %v2160_v48 }
 0xf04   :  { %v2068_v9 = vmul.f32 1.442695, %v2059_v52  ;;  %v3060_v56 = vpop.eup %3059 }
 0xf05   :  { %2072 = vadd.xlane.f32.xlu0 %v3060_v56  ;;  %v3062_v15 = vpop.eup %3061 }
 0xf06   :  { %3069 = vpow2.f32 %v2068_v9  ;;  %2166 = vadd.xlane.f32.xlu1 %v3058_v55 }
 0xf08   :  { %v3064_v57 = vpop.eup %3063 }
 0xf09   :  { %2168 = vadd.xlane.f32.xlu0 %v3064_v57 }
 0xf0a   :  { %2074 = vadd.xlane.f32.xlu1 %v3062_v15 }
 0xf0c   :  { %v3066_v58 = vpop.eup %3065 }
 0xf0d   :  { %v3068_v59 = vpop.eup %3067  ;;  %2076 = vadd.xlane.f32.xlu0 %v3066_v58 }
 0xf0e   :  { %2170 = vadd.xlane.f32.xlu1 %v3068_v59 }
 0xf10   :  { %v3070_v60 = vpop.eup %3069 }
 0xf11   :  { %2078 = vadd.xlane.f32.xlu0 %v3070_v60 }
 0xf8a   :  { %v2165_v61 = vpop.xlane.xlu0 %2164 }
 0xf8b   :  { %v2163_v62 = vpop.xlane.xlu1 %2162  ;;  %3071 = vrcp.f32 %v2165_v61 }
 0xf8c   :  { %3073 = vrcp.f32 %v2163_v62 }
 0xf8f   :  { %v2071_v63 = vpop.xlane.xlu1 %2070 }
 0xf90   :  { %3075 = vrcp.f32 %v2071_v63 }
 0xf92   :  { %v2073_v1 = vpop.xlane.xlu0 %2072 }
 0xf93   :  { %v2167_v0 = vpop.xlane.xlu1 %2166  ;;  %3077 = vrcp.f32 %v2073_v1 }
 0xf94   :  { %3079 = vrcp.f32 %v2167_v0 }
 0xf95   :  { %v3072_v2 = vpop.eup %3071 }
 0xf96   :  { %v3074_v3 = vpop.eup %3073  ;;  %v2178_v4 = vmul.f32 %v3072_v2, %v3052_v43  ;;  %v2169_v7 = vpop.xlane.xlu0 %2168 }
 0xf97   :  { %v2075_v5 = vpop.xlane.xlu1 %2074  ;;  %v2177_v11 = vmul.f32 %v3074_v3, %v3054_v45  ;;  %3081 = vrcp.f32 %v2169_v7 }
 0xf98   :  { %3083 = vrcp.f32 %v2075_v5 }
 0xf99   :  { %v2182_v8 = vpack.c.bf16 %v2178_v4, %v2177_v11 }
 0xf9a   :  { %v2077_v17 = vpop.xlane.xlu0 %2076  ;;  %v3076_v18 = vpop.eup %3075 }
 0xf9b   :  { %v2171_v16 = vpop.xlane.xlu1 %2170  ;;  %2237 = vmatprep.mubr.bf16.mxu1 %v2182_v8  ;;  %v2085_v36 = vmul.f32 %v3076_v18, %v3056_v50 }
 0xf9c   :  { %3085 = vrcp.f32 %v2171_v16 }
 0xf9d   :  { %3087 = vrcp.f32 %v2077_v17  ;;  %v3078_v19 = vpop.eup %3077 }
 0xf9e   :  { %v2079_v22 = vpop.xlane.xlu0 %2078  ;;  %v2086_v23 = vmul.f32 %v3078_v19, %v3060_v56  ;;  %v3080_v25 = vpop.eup %3079 }
 0xf9f   :  { %3089 = vrcp.f32 %v2079_v22  ;;  %v2179_v13 = vmul.f32 %v3080_v25, %v3058_v55 }
 0xfa0   :  { %v2090_v26 = vpack.c.bf16 %v2086_v23, %v2085_v36 }
 0xfa1   :  { %v3082_v54 = vpop.eup %3081 }
 0xfa2   :  { %2238 = vmatmul.mubr.bf16.vlgmr.msra.gmra.mrb[36].mxu1 %v2090_v26  ;;  %v2180_v27 = vmul.f32 %v3082_v54, %v3064_v57  ;;  %v3084_v28 = vpop.eup %3083 }
 0xfa3   :  { %v2087_v30 = vmul.f32 %v3084_v28, %v3062_v15 }
 0xfa4   :  { %v2183_v10 = vpack.c.bf16 %v2180_v27, %v2179_v13 }
 0xfa6   :  { %v3086_v20 = vpop.eup %3085  ;;  %2245 = vmatprep.mubr.bf16.mxu1 %v2183_v10 }
 0xfa7   :  { %v3088_v21 = vpop.eup %3087  ;;  %v2181_v29 = vmul.f32 %v3086_v20, %v3068_v59 }
 0xfa8   :  { %v2088_v31 = vmul.f32 %v3088_v21, %v3066_v58 }
 0xfa9   :  { %v2184_v32 = vpack.c.bf16 %v2181_v29, %v2181_v29  ;;  %v3090_v34 = vpop.eup %3089 }
 0xfaa   :  { %v2091_v33 = vpack.c.bf16 %v2088_v31, %v2087_v30  ;;  %v2089_v53 = vmul.f32 %v3090_v34, %v3070_v60 }
 0xfac   :  { %2246 = vmatmul.mubr.bf16.gmra.mrb[40].mxu1 %v2091_v33  ;;  %v2092_v14 = vpack.c.bf16 %v2089_v53, %v2089_v53 }
 0xfad   :  { %2253 = vmatprep.mubr.bf16.mxu1 %v2184_v32 }
 0xfb4   :  { %2254 = vmatmul.mubr.bf16.gmra.mrb[44].mxu1 %v2092_v14 }
 0xfb5   :  { %2856 = vmatprep.mubr.msk.f32.mxu1 %vm3121_vm2, %v3120_v12 }
0x1075   :  { %v2660_v35 = vpop.f32.mrb[36].mxu1 }
0x1076   :  { %v2661_v6 = vpop.f32.mrb[37].mxu1 }
0x1077   :  { %v2662_v38 = vadd.f32 %v2661_v6, %v2660_v35  ;;  %v2663_v39 = vpop.f32.mrb[38].mxu1 }
0x1078   :  { %v2664_v40 = vpop.f32.mrb[39].mxu1 }
0x1079   :  { %v2240_v41 = vadd.f32 %v2662_v38, %v2447_v37  ;;  %v2665_v42 = vadd.f32 %v2664_v40, %v2663_v39 }
0x107b   :  { %v2243_v43 = vadd.f32 %v2665_v42, %v2447_v37  ;;  %2266 = vrot.lane.b32.xlu1 %v2240_v41, %s3126_s30 }
0x107d   :  { %2268 = vrot.lane.b32.xlu0 %v2243_v43, %s3126_s30 }
0x107f   :  { %v2666_v44 = vpop.f32.mrb[40].mxu1 }
0x1080   :  { %v2667_v45 = vpop.f32.mrb[41].mxu1 }
0x1081   :  { %v2668_v46 = vadd.f32 %v2667_v45, %v2666_v44  ;;  %v2669_v47 = vpop.f32.mrb[42].mxu1 }
0x1082   :  { %v2670_v48 = vpop.f32.mrb[43].mxu1 }
0x1083   :  { %v2248_v49 = vadd.f32 %v2668_v46, %v2447_v37  ;;  %v2671_v50 = vadd.f32 %v2670_v48, %v2669_v47 }
0x1085   :  { %2270 = vrot.lane.b32.xlu1 %v2248_v49, %s3126_s30  ;;  %v2251_v51 = vadd.f32 %v2671_v50, %v2447_v37 }
0x1087   :  { %v2672_v52 = vpop.f32.mrb[44].mxu1 }
0x1088   :  { %v2673_v55 = vpop.f32.mrb[45].mxu1 }
0x1089   :  { %v2674_v9 = vadd.f32 %v2673_v55, %v2672_v52  ;;  %2272 = vrot.lane.b32.xlu1 %v2251_v51, %s3126_s30  ;;  %v2675_v56 = vpop.f32.mrb[46].mxu1 }
0x108a   :  { %v2676_v15 = vpop.f32.mrb[47].mxu1 }
0x108b   :  { %v2256_v57 = vadd.f32 %v2674_v9, %v2447_v37 }
0x108d   :  { %2274 = vrot.lane.b32.xlu0 %v2256_v57, %s3126_s30 }
0x10ed   :  { %v2267_v58 = vpop.permute.xlu1 %2266 }
0x10ee   :  { %v2281_v59 = vadd.f32 %v2267_v58, %v2240_v41 }
0x10ef   :  { %v2269_v60 = vpop.permute.xlu0 %2268 }
0x10f0   :  { %v2282_v61 = vadd.f32 %v2269_v60, %v2243_v43  ;;  %v2286_v62 = vmul.f32 0.5, %v2281_v59 }
0x10f2   :  { %v2287_v63 = vmul.f32 0.5, %v2282_v61 }
0x10f4   :  { %v2872_v0 = vpack.c.bf16 %v2287_v63, %v2286_v62 }
0x10f6   :  { %2874 = vmatpush3.bf16.xpose.msk.msra.mxu1 %vm2873_vm14, %v2872_v0 }
0x10f7   :  { %v2271_v1 = vpop.permute.xlu1 %2270  ;;  %2875 = vmatprep.subr.bf16.mxu1 %v3123_v24 }
0x10f8   :  { %v2283_v2 = vadd.f32 %v2271_v1, %v2248_v49 }
0x10fa   :  { %v2288_v5 = vmul.f32 0.5, %v2283_v2 }
0x10fb   :  { %v2273_v3 = vpop.permute.xlu1 %2272 }
0x10fc   :  { %v2284_v4 = vadd.f32 %v2273_v3, %v2251_v51 }
0x10fe   :  { %v2289_v7 = vmul.f32 0.5, %v2284_v4 }
0x10ff   :  { %v2275_v8 = vpop.permute.xlu0 %2274 }
0x1100   :  { %v2876_v11 = vpack.c.bf16 %v2289_v7, %v2288_v5  ;;  %v2285_v16 = vadd.f32 %v2275_v8, %v2256_v57 }
0x1102   :  { %2878 = vmatpush3.bf16.xpose.msk.msra.mxu1 %vm2873_vm14, %v2876_v11  ;;  %v2290_v17 = vmul.f32 0.5, %v2285_v16 }
0x1103   :  { %2854 = vmatprep.subr.mxu1 %v3120_v12 }
0x110a   :  { %2855 = vmatpush3.xpose.msk.msra.mxu1 %vm388_vm1, %v2290_v17 }
0x110d   :  { %2857 = vmatmul.mubr.msk.f32.vlgmr.msra.gmra.mrb[48].mxu1 %vm388_vm1, %v2286_v62 }
0x110e   :  { %2859 = vmatprep.mubr.msk.f32.mxu1 %vm3121_vm2, %v3120_v12 }
0x1111   :  { %2860 = vmatmul.mubr.msk.f32.gmra.mrb[50].mxu1 %vm388_vm1, %v2287_v63 }
0x1112   :  { %2862 = vmatprep.mubr.msk.f32.mxu1 %vm3121_vm2, %v3120_v12 }
0x1115   :  { %2863 = vmatmul.mubr.msk.f32.gmra.mrb[52].mxu1 %vm388_vm1, %v2288_v5 }
0x1116   :  { %2865 = vmatprep.mubr.msk.f32.mxu1 %vm3121_vm2, %v3120_v12 }
0x1119   :  { %2866 = vmatmul.mubr.msk.f32.gmra.mrb[54].mxu1 %vm388_vm1, %v2289_v7 }
0x111a   :  { %2868 = vmatprep.mubr.msk.f32.mxu1 %vm3121_vm2, %v3120_v12 }
0x111d   :  { %2869 = vmatmul.mubr.msk.f32.gmra.mrb[56].mxu1 %vm388_vm1, %v2290_v17 }
0x11e0   :  { %v2375_v24 = vpop.f32.mrb[48].mxu1 }
0x11e1   :  { %2399 = vst [vmem:[%s3510_s2] sm:$0xff] %v2375_v24  ;;  %v2858_v18 = vpop.f32.mrb[49].mxu1 }
0x11e4   :  { %v2380_v19 = vpop.f32.mrb[50].mxu1 }
0x11e5   :  { %2400 = vst [vmem:[%s3510_s2 + $0x8] sm:$0xff] %v2380_v19  ;;  %v2861_v22 = vpop.f32.mrb[51].mxu1 }
0x11e8   :  { %v2385_v36 = vpop.f32.mrb[52].mxu1 }
0x11e9   :  { %2401 = vst [vmem:[%s3510_s2 + $0x10] sm:$0xff] %v2385_v36  ;;  %v2864_v12 = vpop.f32.mrb[53].mxu1 }
0x11ec   :  { %v2390_v23 = vpop.f32.mrb[54].mxu1 }
0x11ed   :  { %2402 = vst [vmem:[%s3510_s2 + $0x18] sm:$0xff] %v2390_v23  ;;  %v2867_v25 = vpop.f32.mrb[55].mxu1 }
0x11f0   :  { %v2395_v26 = vpop.f32.mrb[56].mxu1 }
0x11f1   :  { %2403 = vst [vmem:[%s3510_s2 + $0x20] sm:$0xff] %v2395_v26  ;;  %v2870_v54 = vpop.f32.mrb[57].mxu1 }
0x11f2   :  { %2408 = vsyncpa [#allocation3], 1 }

</bundles_post_ra>
